<compile_context>
chip_gen: v7x
topology: tpu7x:2x2x1
jax: 0.10.0
libtpu: 0.0.40
codegen_flags: <defaults>
</compile_context>

<pallas_src>
import functools

import jax
import jax.numpy as jnp
from jax.experimental import pallas as pl
from jax.experimental.pallas import tpu as pltpu


# ----------------------------------------------------------------------------
# Tiling / VMEM helpers
# ----------------------------------------------------------------------------
def _round_up(x, m):
    return ((x + m - 1) // m) * m


def _pick_tm(m):
    """Lane tile over M = N*Ho*Wo (the lane-dense dim of the conv output).
    Full extent when small (a full-dim block is always legal); 2048 otherwise
    so per-step HBM time dominates the ~0.35us grid-step overhead and >=2
    steps exist for the v7x megacore."""
    return m if m <= 2048 else 2048


def _vmem_limit(per_buffer_bytes):
    """Double-buffered working set + headroom, clamped well inside v7x 64MiB."""
    need = 2 * per_buffer_bytes + (4 << 20)
    return int(min(max(need, 16 << 20), 48 << 20))


# ----------------------------------------------------------------------------
# Pallas kernels
# ----------------------------------------------------------------------------
def _blend_kernel(img_ref, hm_ref, ns_ref, thr_ref, blend_ref, mnoise_ref):
    # input = image*(1-hair_matte)*thred + noise*hair_matte ; noise*hair_matte.
    # Blocks: img/ns (1, C, TL), hm (1, 1, TL) -> broadcast over C in-vreg.
    hm = hm_ref[...]
    mn = ns_ref[...] * hm
    blended = img_ref[...] * (1.0 - hm) * thr_ref[0] + mn
    blend_ref[...] = blended.astype(blend_ref.dtype)   # bf16, feeds conv1 GEMM
    mnoise_ref[...] = mn                                # f32 module output


def _conv_bias_kernel(w_ref, p_ref, b_ref, y_ref, *, relu):
    # (Cout, K) bf16 @ (K, TM) bf16 -> f32, fused bias column (+ optional ReLU).
    y = jnp.dot(w_ref[...], p_ref[...], preferred_element_type=jnp.float32)
    y = y + b_ref[...]                                  # (Cout, 1) lane-broadcast
    if relu:
        y = jnp.maximum(y, 0.0)
    y_ref[...] = y.astype(y_ref.dtype)


def _conv_stats_kernel(w_ref, p_ref, y_ref, st_ref, *, tm, m_valid, need_mask):
    # Bias-free conv GEMM (ahead of BatchNorm) plus per-tile channel sum and
    # sum-of-squares.  Padded lanes of the last tile are masked out so the
    # statistics stay exact; the masked conv-output writeback is automatic.
    y = jnp.dot(w_ref[...], p_ref[...], preferred_element_type=jnp.float32)
    y_ref[...] = y.astype(y_ref.dtype)
    if need_mask:
        col = jax.lax.broadcasted_iota(jnp.int32, y.shape, 1)
        y = jnp.where(pl.program_id(0) * tm + col < m_valid, y, 0.0)
    s1 = jnp.sum(y, axis=1, keepdims=True)              # (Cout, 1)
    s2 = jnp.sum(y * y, axis=1, keepdims=True)          # (Cout, 1)
    sel = jax.lax.broadcasted_iota(jnp.int32, (y.shape[0], 2), 1)
    st_ref[0] = jnp.where(sel == 0, s1, s2)             # single (Cout, 2) store


def _bn_relu_kernel(y_ref, sc_ref, sh_ref, o_ref):
    # Folded BatchNorm affine + ReLU, f32 math, bf16 in/out.
    y = y_ref[...].astype(jnp.float32)
    o_ref[...] = jnp.maximum(y * sc_ref[...] + sh_ref[...], 0.0).astype(o_ref.dtype)


# ----------------------------------------------------------------------------
# Blend (image / noise masking)
# ----------------------------------------------------------------------------
def blend_inputs(image, mask, noise, thred):
    """Returns (blended NCHW bf16, masked_noise NCHW f32, hair_matte NCHW f32)."""
    N, C, H, W = image.shape
    hw = H * W
    hair_matte = mask[:, 0:1, :, :]                      # (N, 1, H, W)
    img3 = image.reshape(N, C, hw)
    ns3 = noise.reshape(N, C, hw)
    hm3 = hair_matte.reshape(N, 1, hw)
    thr = jnp.asarray([thred], jnp.float32)

    tl = hw if hw <= 32768 else 32768
    nl = pl.cdiv(hw, tl)

    spec_c = pl.BlockSpec((1, C, tl), lambda n, l: (n, 0, l))
    spec_1 = pl.BlockSpec((1, 1, tl), lambda n, l: (n, 0, l))
    per_buf = tl * (C * 4 + 4 + C * 4 + C * 2 + C * 4)

    blended, masked_noise = pl.pallas_call(
        _blend_kernel,
        out_shape=(jax.ShapeDtypeStruct((N, C, hw), jnp.bfloat16),
                   jax.ShapeDtypeStruct((N, C, hw), jnp.float32)),
        grid=(N, nl),
        in_specs=[spec_c, spec_1, spec_c,
                  pl.BlockSpec(memory_space=pltpu.MemorySpace.SMEM)],
        out_specs=(spec_c, spec_c),
        compiler_params=pltpu.CompilerParams(
            dimension_semantics=("parallel", "parallel"),
            vmem_limit_bytes=_vmem_limit(per_buf)),
    )(img3, hm3, ns3, thr)

    return (blended.reshape(N, C, H, W),
            masked_noise.reshape(N, C, H, W),
            hair_matte)


# ----------------------------------------------------------------------------
# Conv as channels-on-sublanes / M-on-lanes bf16 GEMM (+ fused BN statistics)
# ----------------------------------------------------------------------------
def _im2col_cnhw(xp, kh, kw, stride):
    """xp: padded (Cin, N, Hp, Wp) -> patches^T (Cin*kh*kw, N*Ho*Wo).
    K order (Cin, kh, kw) matches weight.reshape(Cout, Cin*kh*kw); the final
    reshape is contiguous (no post-stack transpose)."""
    Cin, N, Hp, Wp = xp.shape
    Ho = (Hp - kh) // stride + 1
    Wo = (Wp - kw) // stride + 1
    cols = []
    for i in range(kh):
        for j in range(kw):
            cols.append(xp[:, :, i:i + stride * Ho:stride, j:j + stride * Wo:stride])
    p = jnp.stack(cols, axis=1)                          # (Cin, kh*kw, N, Ho, Wo)
    return p.reshape(Cin * kh * kw, N * Ho * Wo), Ho, Wo


def conv2d_cnhw(x, weight, bias, *, stride, padding, relu, with_stats):
    """Reflect-padded conv2d in the transposed (channels-first) orientation.

    x: (Cin, N, H, W) bf16; weight: (Cout, Cin, kh, kw) f32 (PyTorch layout);
    bias: (Cout,) f32 or None (BN layers use bias=False).
    Returns (y (cpad, M) bf16, stats (nt, cpad, 2) f32 or None, meta dict).
    """
    Cin, N, H, W = x.shape
    Cout, _, kh, kw = weight.shape
    assert H > padding and W > padding, "reflect pad requires dim > padding"
    cpad = _round_up(Cout, 8)

    xp = jnp.pad(x.astype(jnp.bfloat16),
                 ((0, 0), (0, 0), (padding, padding), (padding, padding)),
                 mode="reflect")
    pT, Ho, Wo = _im2col_cnhw(xp, kh, kw, stride)
    K, M = pT.shape
    kpad = _round_up(K, 128)

    w_mat = weight.reshape(Cout, K).astype(jnp.bfloat16)
    if cpad != Cout or kpad != K:
        w_mat = jnp.pad(w_mat, ((0, cpad - Cout), (0, kpad - K)))
    if kpad != K:
        # Only conv1 (K = 3*49 = 147) hits this; layers 1-3 have K = 128/256/512.
        pT = jnp.pad(pT, ((0, kpad - K), (0, 0)))

    tm = _pick_tm(M)
    nt = pl.cdiv(M, tm)

    w_spec = pl.BlockSpec((cpad, kpad), lambda i: (0, 0))
    p_spec = pl.BlockSpec((kpad, tm), lambda i: (0, i))
    y_spec = pl.BlockSpec((cpad, tm), lambda i: (0, i))
    per_buf = 2 * (cpad * kpad + kpad * tm + cpad * tm)
    cparams = pltpu.CompilerParams(dimension_semantics=("parallel",),
                                   vmem_limit_bytes=_vmem_limit(per_buf))

    if with_stats:
        kern = functools.partial(_conv_stats_kernel, tm=tm, m_valid=M,
                                 need_mask=(M % tm != 0))
        y, stats = pl.pallas_call(
            kern,
            out_shape=(jax.ShapeDtypeStruct((cpad, M), jnp.bfloat16),
                       jax.ShapeDtypeStruct((nt, cpad, 2), jnp.float32)),
            grid=(nt,),
            in_specs=[w_spec, p_spec],
            out_specs=(y_spec, pl.BlockSpec((1, cpad, 2), lambda i: (i, 0, 0))),
            compiler_params=cparams,
        )(w_mat, pT)
    else:
        b_col = bias.astype(jnp.float32)
        if cpad != Cout:
            b_col = jnp.pad(b_col, (0, cpad - Cout))
        b_col = b_col.reshape(cpad, 1)
        y = pl.pallas_call(
            functools.partial(_conv_bias_kernel, relu=relu),
            out_shape=jax.ShapeDtypeStruct((cpad, M), jnp.bfloat16),
            grid=(nt,),
            in_specs=[w_spec, p_spec, pl.BlockSpec((cpad, 1), lambda i: (0, 0))],
            out_specs=y_spec,
            compiler_params=cparams,
        )(w_mat, pT, b_col)
        stats = None

    meta = dict(N=N, Ho=Ho, Wo=Wo, Cout=Cout, cpad=cpad, M=M, tm=tm, nt=nt)
    return y, stats, meta


def batchnorm_relu(y, stats, meta, gamma, beta, eps=1e-5):
    """Training-mode BatchNorm2d (batch stats, biased var) + ReLU, lane-dense.

    Mean/var come from the per-tile partial sums emitted by the conv kernel,
    so the activation is streamed exactly once more (by this kernel)."""
    Cout, cpad, M = meta["Cout"], meta["cpad"], meta["M"]
    tot = jnp.sum(stats, axis=0)[:Cout]                  # (Cout, 2)
    inv_n = 1.0 / float(M)
    mean = tot[:, 0] * inv_n
    var = jnp.maximum(tot[:, 1] * inv_n - mean * mean, 0.0)
    scale = gamma * jax.lax.rsqrt(var + eps)
    shift = beta - mean * scale
    if cpad != Cout:
        scale = jnp.pad(scale, (0, cpad - Cout))
        shift = jnp.pad(shift, (0, cpad - Cout))
    sc = scale.reshape(cpad, 1)
    sh = shift.reshape(cpad, 1)

    tm, nt = meta["tm"], meta["nt"]
    per_buf = 2 * (cpad * tm * 2) + 2 * cpad * 4
    return pl.pallas_call(
        _bn_relu_kernel,
        out_shape=jax.ShapeDtypeStruct((cpad, M), jnp.bfloat16),
        grid=(nt,),
        in_specs=[pl.BlockSpec((cpad, tm), lambda i: (0, i)),
                  pl.BlockSpec((cpad, 1), lambda i: (0, 0)),
                  pl.BlockSpec((cpad, 1), lambda i: (0, 0))],
        out_specs=pl.BlockSpec((cpad, tm), lambda i: (0, i)),
        compiler_params=pltpu.CompilerParams(
            dimension_semantics=("parallel",),
            vmem_limit_bytes=_vmem_limit(per_buf)),
    )(y, sc, sh)


def _to_cnhw(y, meta):
    N, Ho, Wo, Cout = meta["N"], meta["Ho"], meta["Wo"], meta["Cout"]
    return y[:Cout].reshape(Cout, N, Ho, Wo)


def _cnhw_to_nchw_f32(x):
    # module boundary only: channels-first internal layout -> NCHW f32
    return jnp.transpose(x, (1, 0, 2, 3)).astype(jnp.float32)


# ----------------------------------------------------------------------------
# BgEncoder forward
# ----------------------------------------------------------------------------
def bg_encoder_forward(params, image, mask, noise, thred):
    blended, masked_noise, hair_matte = blend_inputs(image, mask, noise, thred)

    # channels-first "CNHW" layout persists through every conv layer; the only
    # transposes are this tiny 3-channel one and the NCHW module boundary.
    x_cn = jnp.transpose(blended, (1, 0, 2, 3))          # (3, N, H, W) bf16

    # conv1: ReflectionPad2d(3) + Conv2d(3, ngf, 7, 1, bias=True) + ReLU (fused).
    y, _, m0 = conv2d_cnhw(x_cn, params["conv1_w"], params["conv1_b"],
                           stride=1, padding=3, relu=True, with_stats=False)
    x0 = _to_cnhw(y, m0)

    # layer1..3: ReflectionPad2d(1) + Conv2d(k=4, s=2, bias=False) + BN + ReLU.
    def bn_layer(x_cnhw, w, gamma, beta):
        yp, stats, m = conv2d_cnhw(x_cnhw, w, None, stride=2, padding=1,
                                   relu=False, with_stats=True)
        yb = batchnorm_relu(yp, stats, m, gamma, beta)
        return _to_cnhw(yb, m)

    x1 = bn_layer(x0, params["l1_w"], params["l1_gamma"], params["l1_beta"])
    x2 = bn_layer(x1, params["l2_w"], params["l2_gamma"], params["l2_beta"])
    x3 = bn_layer(x2, params["l3_w"], params["l3_gamma"], params["l3_beta"])

    # nearest-neighbor downsample of the hair matte by exact integer factors
    # (F.interpolate 'nearest' with integer ratio == strided slicing).
    hair_matte1 = hair_matte[:, :, ::2, ::2]
    hair_matte2 = hair_matte[:, :, ::4, ::4]
    hair_matte3 = hair_matte[:, :, ::8, ::8]

    xs = [_cnhw_to_nchw_f32(a) for a in (x3, x2, x1, x0)]   # NCHW f32 boundary
    return (xs,
            [hair_matte3, hair_matte2, hair_matte1, hair_matte],
            masked_noise)


# ----------------------------------------------------------------------------
# Main
# ----------------------------------------------------------------------------
if __name__ == "__main__":
    ngf = 8
    N, H, W = 2, 16, 16
    key = jax.random.PRNGKey(0)
    keys = jax.random.split(key, 8)

    image = jax.random.normal(keys[0], (N, 3, H, W), jnp.float32)
    mask = jax.random.uniform(keys[1], (N, 3, H, W), jnp.float32)
    noise = jax.random.normal(keys[2], (N, 3, H, W), jnp.float32)
    thred = 0.8

    params = {
        "conv1_w": 0.05 * jax.random.normal(keys[3], (ngf, 3, 7, 7), jnp.float32),
        "conv1_b": 0.05 * jax.random.normal(keys[4], (ngf,), jnp.float32),
        "l1_w": 0.05 * jax.random.normal(keys[5], (2 * ngf, ngf, 4, 4), jnp.float32),
        "l1_gamma": jnp.ones((2 * ngf,), jnp.float32),
        "l1_beta": jnp.zeros((2 * ngf,), jnp.float32),
        "l2_w": 0.05 * jax.random.normal(keys[6], (4 * ngf, 2 * ngf, 4, 4), jnp.float32),
        "l2_gamma": jnp.ones((4 * ngf,), jnp.float32),
        "l2_beta": jnp.zeros((4 * ngf,), jnp.float32),
        "l3_w": 0.05 * jax.random.normal(keys[7], (8 * ngf, 4 * ngf, 4, 4), jnp.float32),
        "l3_gamma": jnp.ones((8 * ngf,), jnp.float32),
        "l3_beta": jnp.zeros((8 * ngf,), jnp.float32),
    }

    fwd = jax.jit(bg_encoder_forward)
    xs, mattes, masked_noise = fwd(params, image, mask, noise, thred)

    for a in xs + mattes + [masked_noise]:
        jax.block_until_ready(a)

    # sanity on shapes implied by the PyTorch forward
    assert [tuple(a.shape) for a in xs] == [(N, 8 * ngf, H // 8, W // 8),
                                            (N, 4 * ngf, H // 4, W // 4),
                                            (N, 2 * ngf, H // 2, W // 2),
                                            (N, ngf, H, W)]
    assert [tuple(a.shape) for a in mattes] == [(N, 1, H // 8, W // 8),
                                                (N, 1, H // 4, W // 4),
                                                (N, 1, H // 2, W // 2),
                                                (N, 1, H, W)]
    assert masked_noise.shape == (N, 3, H, W)
    print("KERNEL_OK")
</pallas_src>

<mosaic_0001>
module attributes {stable_mosaic.version = 11 : i64} {
  func.func @_blend_kernel(%arg0: i32, %arg1: i32, %arg2: memref<1x3x256xf32, #tpu.memory_space<vmem>>, %arg3: memref<1x1x256xf32, #tpu.memory_space<vmem>>, %arg4: memref<1x3x256xf32, #tpu.memory_space<vmem>>, %arg5: memref<1xf32, #tpu.memory_space<smem>>, %arg6: memref<1x3x256xbf16, #tpu.memory_space<vmem>>, %arg7: memref<1x3x256xf32, #tpu.memory_space<vmem>>) attributes {dimension_semantics = [#tpu.dimension_semantics<parallel>, #tpu.dimension_semantics<parallel>], iteration_bounds = array<i64: 2, 1>, scalar_prefetch = 0 : i64, scratch_operands = 0 : i64, tpu.core_type = #tpu.core_type<tc>, window_params = [{transform_indices = @transform_0, window_bounds = array<i64: 1, 3, 256>}, {transform_indices = @transform_1, window_bounds = array<i64: 1, 1, 256>}, {transform_indices = @transform_2, window_bounds = array<i64: 1, 3, 256>}, {transform_indices = @transform_3, window_bounds = array<i64: 1>}, {transform_indices = @transform_4, window_bounds = array<i64: 1, 3, 256>}, {transform_indices = @transform_5, window_bounds = array<i64: 1, 3, 256>}]} {
    %c0 = arith.constant 0 : index
    %c0_0 = arith.constant 0 : index
    %c0_1 = arith.constant 0 : index
    %0 = vector.load %arg3[%c0, %c0_0, %c0_1] : memref<1x1x256xf32, #tpu.memory_space<vmem>>, vector<1x1x256xf32>
    %c0_2 = arith.constant 0 : index
    %c0_3 = arith.constant 0 : index
    %c0_4 = arith.constant 0 : index
    %1 = vector.load %arg4[%c0_2, %c0_3, %c0_4] : memref<1x3x256xf32, #tpu.memory_space<vmem>>, vector<1x3x256xf32>
    %2 = vector.broadcast %0 : vector<1x1x256xf32> to vector<1x3x256xf32>
    %3 = arith.mulf %1, %2 : vector<1x3x256xf32>
    %c0_5 = arith.constant 0 : index
    %c0_6 = arith.constant 0 : index
    %c0_7 = arith.constant 0 : index
    %4 = vector.load %arg2[%c0_5, %c0_6, %c0_7] : memref<1x3x256xf32, #tpu.memory_space<vmem>>, vector<1x3x256xf32>
    %cst = arith.constant 1.000000e+00 : f32
    %5 = vector.broadcast %cst : f32 to vector<1x1x256xf32>
    %6 = arith.subf %5, %0 : vector<1x1x256xf32>
    %7 = vector.broadcast %6 : vector<1x1x256xf32> to vector<1x3x256xf32>
    %8 = arith.mulf %4, %7 : vector<1x3x256xf32>
    %c0_8 = arith.constant 0 : index
    %9 = memref.load %arg5[%c0_8] : memref<1xf32, #tpu.memory_space<smem>>
    %10 = vector.broadcast %9 : f32 to vector<1x3x256xf32>
    %11 = arith.mulf %8, %10 : vector<1x3x256xf32>
    %12 = arith.addf %11, %3 : vector<1x3x256xf32>
    %13 = arith.truncf %12 : vector<1x3x256xf32> to vector<1x3x256xbf16>
    %c0_9 = arith.constant 0 : index
    %c0_10 = arith.constant 0 : index
    %c0_11 = arith.constant 0 : index
    %14 = vector.load %arg6[%c0_9, %c0_10, %c0_11] : memref<1x3x256xbf16, #tpu.memory_space<vmem>>, vector<1x3x256xbf16>
    tpu.vector_store %arg6[%c0_9, %c0_10, %c0_11], %13 {strides = array<i32>} : memref<1x3x256xbf16, #tpu.memory_space<vmem>>, vector<1x3x256xbf16>,
    %c0_12 = arith.constant 0 : index
    %c0_13 = arith.constant 0 : index
    %c0_14 = arith.constant 0 : index
    %15 = vector.load %arg7[%c0_12, %c0_13, %c0_14] : memref<1x3x256xf32, #tpu.memory_space<vmem>>, vector<1x3x256xf32>
    tpu.vector_store %arg7[%c0_12, %c0_13, %c0_14], %3 {strides = array<i32>} : memref<1x3x256xf32, #tpu.memory_space<vmem>>, vector<1x3x256xf32>,
    return
  }
  func.func @transform_0(%arg0: i32, %arg1: i32) -> (i32, i32, i32) {
    %c0_i32 = arith.constant 0 : i32
    %c0_i32_0 = arith.constant 0 : i32
    return %arg0, %c0_i32, %arg1 : i32, i32, i32
  }
  func.func @transform_1(%arg0: i32, %arg1: i32) -> (i32, i32, i32) {
    %c0_i32 = arith.constant 0 : i32
    %c0_i32_0 = arith.constant 0 : i32
    return %arg0, %c0_i32, %arg1 : i32, i32, i32
  }
  func.func @transform_2(%arg0: i32, %arg1: i32) -> (i32, i32, i32) {
    %c0_i32 = arith.constant 0 : i32
    %c0_i32_0 = arith.constant 0 : i32
    return %arg0, %c0_i32, %arg1 : i32, i32, i32
  }
  func.func @transform_3(%arg0: i32, %arg1: i32) -> i32 {
    %c0_i32 = arith.constant 0 : i32
    %c0_i32_0 = arith.constant 0 : i32
    return %c0_i32 : i32
  }
  func.func @transform_4(%arg0: i32, %arg1: i32) -> (i32, i32, i32) {
    %c0_i32 = arith.constant 0 : i32
    %c0_i32_0 = arith.constant 0 : i32
    return %arg0, %c0_i32, %arg1 : i32, i32, i32
  }
  func.func @transform_5(%arg0: i32, %arg1: i32) -> (i32, i32, i32) {
    %c0_i32 = arith.constant 0 : i32
    %c0_i32_0 = arith.constant 0 : i32
    return %arg0, %c0_i32, %arg1 : i32, i32, i32
  }
}

module attributes {stable_mosaic.version = 11 : i64} {
  func.func @_conv_bias_kernel(%arg0: i32, %arg1: memref<8x256xbf16, #tpu.memory_space<vmem>>, %arg2: memref<256x512xbf16, #tpu.memory_space<vmem>>, %arg3: memref<8x1xf32, #tpu.memory_space<vmem>>, %arg4: memref<8x512xbf16, #tpu.memory_space<vmem>>) attributes {dimension_semantics = [#tpu.dimension_semantics<parallel>], iteration_bounds = array<i64: 1>, scalar_prefetch = 0 : i64, scratch_operands = 0 : i64, tpu.core_type = #tpu.core_type<tc>, window_params = [{pipeline_mode = #tpu.pipeline_mode<synchronous>, transform_indices = @transform_0, window_bounds = array<i64: 8, 256>}, {transform_indices = @transform_1, window_bounds = array<i64: 256, 512>}, {pipeline_mode = #tpu.pipeline_mode<synchronous>, transform_indices = @transform_2, window_bounds = array<i64: 8, 1>}, {transform_indices = @transform_3, window_bounds = array<i64: 8, 512>}]} {
    %c0 = arith.constant 0 : index
    %c0_0 = arith.constant 0 : index
    %0 = vector.load %arg1[%c0, %c0_0] : memref<8x256xbf16, #tpu.memory_space<vmem>>, vector<8x256xbf16>
    %c0_1 = arith.constant 0 : index
    %c0_2 = arith.constant 0 : index
    %1 = vector.load %arg2[%c0_1, %c0_2] : memref<256x512xbf16, #tpu.memory_space<vmem>>, vector<256x512xbf16>
    %cst = arith.constant dense<0.000000e+00> : vector<8x512xf32>
    %2 = tpu.matmul %0, %1, %cst {dimension_numbers = #tpu.dot_dimension_numbers<[1], [0], [0], [1], [0, 0, 1, 1], [], []>} : vector<8x256xbf16>, vector<256x512xbf16>, vector<8x512xf32> -> vector<8x512xf32>
    %c0_3 = arith.constant 0 : index
    %c0_4 = arith.constant 0 : index
    %3 = vector.load %arg3[%c0_3, %c0_4] : memref<8x1xf32, #tpu.memory_space<vmem>>, vector<8x1xf32>
    %4 = vector.broadcast %3 : vector<8x1xf32> to vector<8x512xf32>
    %5 = arith.addf %2, %4 : vector<8x512xf32>
    %cst_5 = arith.constant 0.000000e+00 : f32
    %6 = vector.broadcast %cst_5 : f32 to vector<8x512xf32>
    %7 = arith.maximumf %5, %6 : vector<8x512xf32>
    %8 = arith.truncf %7 : vector<8x512xf32> to vector<8x512xbf16>
    %c0_6 = arith.constant 0 : index
    %c0_7 = arith.constant 0 : index
    %9 = vector.load %arg4[%c0_6, %c0_7] : memref<8x512xbf16, #tpu.memory_space<vmem>>, vector<8x512xbf16>
    tpu.vector_store %arg4[%c0_6, %c0_7], %8 {strides = array<i32>} : memref<8x512xbf16, #tpu.memory_space<vmem>>, vector<8x512xbf16>,
    return
  }
  func.func @transform_0(%arg0: i32) -> (i32, i32) {
    %c0_i32 = arith.constant 0 : i32
    %c0_i32_0 = arith.constant 0 : i32
    %c0_i32_1 = arith.constant 0 : i32
    return %c0_i32, %c0_i32_0 : i32, i32
  }
  func.func @transform_1(%arg0: i32) -> (i32, i32) {
    %c0_i32 = arith.constant 0 : i32
    %c0_i32_0 = arith.constant 0 : i32
    return %c0_i32, %arg0 : i32, i32
  }
  func.func @transform_2(%arg0: i32) -> (i32, i32) {
    %c0_i32 = arith.constant 0 : i32
    %c0_i32_0 = arith.constant 0 : i32
    %c0_i32_1 = arith.constant 0 : i32
    return %c0_i32, %c0_i32_0 : i32, i32
  }
  func.func @transform_3(%arg0: i32) -> (i32, i32) {
    %c0_i32 = arith.constant 0 : i32
    %c0_i32_0 = arith.constant 0 : i32
    return %c0_i32, %arg0 : i32, i32
  }
}

module attributes {stable_mosaic.version = 11 : i64} {
  func.func @_conv_stats_kernel(%arg0: i32, %arg1: memref<16x128xbf16, #tpu.memory_space<vmem>>, %arg2: memref<128x128xbf16, #tpu.memory_space<vmem>>, %arg3: memref<16x128xbf16, #tpu.memory_space<vmem>>, %arg4: memref<1x16x2xf32, #tpu.memory_space<vmem>>) attributes {dimension_semantics = [#tpu.dimension_semantics<parallel>], iteration_bounds = array<i64: 1>, scalar_prefetch = 0 : i64, scratch_operands = 0 : i64, tpu.core_type = #tpu.core_type<tc>, window_params = [{pipeline_mode = #tpu.pipeline_mode<synchronous>, transform_indices = @transform_0, window_bounds = array<i64: 16, 128>}, {transform_indices = @transform_1, window_bounds = array<i64: 128, 128>}, {transform_indices = @transform_2, window_bounds = array<i64: 16, 128>}, {transform_indices = @transform_3, window_bounds = array<i64: 1, 16, 2>}]} {
    %c0 = arith.constant 0 : index
    %c0_0 = arith.constant 0 : index
    %0 = vector.load %arg1[%c0, %c0_0] : memref<16x128xbf16, #tpu.memory_space<vmem>>, vector<16x128xbf16>
    %c0_1 = arith.constant 0 : index
    %c0_2 = arith.constant 0 : index
    %1 = vector.load %arg2[%c0_1, %c0_2] : memref<128x128xbf16, #tpu.memory_space<vmem>>, vector<128x128xbf16>
    %cst = arith.constant dense<0.000000e+00> : vector<16x128xf32>
    %2 = tpu.matmul %0, %1, %cst {dimension_numbers = #tpu.dot_dimension_numbers<[1], [0], [0], [1], [0, 0, 1, 1], [], []>} : vector<16x128xbf16>, vector<128x128xbf16>, vector<16x128xf32> -> vector<16x128xf32>
    %3 = arith.truncf %2 : vector<16x128xf32> to vector<16x128xbf16>
    %c0_3 = arith.constant 0 : index
    %c0_4 = arith.constant 0 : index
    %4 = vector.load %arg3[%c0_3, %c0_4] : memref<16x128xbf16, #tpu.memory_space<vmem>>, vector<16x128xbf16>
    tpu.vector_store %arg3[%c0_3, %c0_4], %3 {strides = array<i32>} : memref<16x128xbf16, #tpu.memory_space<vmem>>, vector<16x128xbf16>,
    %cst_5 = arith.constant dense<0.000000e+00> : vector<16xf32>
    %5 = vector.multi_reduction <add>, %2, %cst_5 [1] : vector<16x128xf32> to vector<16xf32>
    %6 = vector.shape_cast %5 : vector<16xf32> to vector<16x1xf32>
    %7 = arith.mulf %2, %2 : vector<16x128xf32>
    %cst_6 = arith.constant dense<0.000000e+00> : vector<16xf32>
    %8 = vector.multi_reduction <add>, %7, %cst_6 [1] : vector<16x128xf32> to vector<16xf32>
    %9 = vector.shape_cast %8 : vector<16xf32> to vector<16x1xf32>
    %10 = tpu.iota {dimensions = array<i32: 1>} : vector<16x2xi32>
    %c0_i32 = arith.constant 0 : i32
    %11 = vector.broadcast %c0_i32 : i32 to vector<16x2xi32>
    %12 = arith.cmpi eq, %10, %11 : vector<16x2xi32>
    %13 = vector.shape_cast %6 : vector<16x1xf32> to vector<16x1xf32>
    %14 = vector.broadcast %13 : vector<16x1xf32> to vector<16x2xf32>
    %15 = vector.shape_cast %9 : vector<16x1xf32> to vector<16x1xf32>
    %16 = vector.broadcast %15 : vector<16x1xf32> to vector<16x2xf32>
    %17 = arith.select %12, %14, %16 : vector<16x2xi1>, vector<16x2xf32>
    %c0_7 = arith.constant 0 : index
    %c0_8 = arith.constant 0 : index
    %c0_9 = arith.constant 0 : index
    %18 = vector.load %arg4[%c0_7, %c0_8, %c0_9] : memref<1x16x2xf32, #tpu.memory_space<vmem>>, vector<1x16x2xf32>
    %19 = vector.shape_cast %18 : vector<1x16x2xf32> to vector<16x2xf32>
    %20 = vector.shape_cast %17 : vector<16x2xf32> to vector<1x16x2xf32>
    tpu.vector_store %arg4[%c0_7, %c0_8, %c0_9], %20 {strides = array<i32>} : memref<1x16x2xf32, #tpu.memory_space<vmem>>, vector<1x16x2xf32>,
    return
  }
  func.func @transform_0(%arg0: i32) -> (i32, i32) {
    %c0_i32 = arith.constant 0 : i32
    %c0_i32_0 = arith.constant 0 : i32
    %c0_i32_1 = arith.constant 0 : i32
    return %c0_i32, %c0_i32_0 : i32, i32
  }
  func.func @transform_1(%arg0: i32) -> (i32, i32) {
    %c0_i32 = arith.constant 0 : i32
    %c0_i32_0 = arith.constant 0 : i32
    return %c0_i32, %arg0 : i32, i32
  }
  func.func @transform_2(%arg0: i32) -> (i32, i32) {
    %c0_i32 = arith.constant 0 : i32
    %c0_i32_0 = arith.constant 0 : i32
    return %c0_i32, %arg0 : i32, i32
  }
  func.func @transform_3(%arg0: i32) -> (i32, i32, i32) {
    %c0_i32 = arith.constant 0 : i32
    %c0_i32_0 = arith.constant 0 : i32
    %c0_i32_1 = arith.constant 0 : i32
    return %arg0, %c0_i32, %c0_i32_0 : i32, i32, i32
  }
}

module attributes {stable_mosaic.version = 11 : i64} {
  func.func @_bn_relu_kernel(%arg0: i32, %arg1: memref<16x128xbf16, #tpu.memory_space<vmem>>, %arg2: memref<16x1xf32, #tpu.memory_space<vmem>>, %arg3: memref<16x1xf32, #tpu.memory_space<vmem>>, %arg4: memref<16x128xbf16, #tpu.memory_space<vmem>>) attributes {dimension_semantics = [#tpu.dimension_semantics<parallel>], iteration_bounds = array<i64: 1>, scalar_prefetch = 0 : i64, scratch_operands = 0 : i64, tpu.core_type = #tpu.core_type<tc>, window_params = [{transform_indices = @transform_0, window_bounds = array<i64: 16, 128>}, {pipeline_mode = #tpu.pipeline_mode<synchronous>, transform_indices = @transform_1, window_bounds = array<i64: 16, 1>}, {pipeline_mode = #tpu.pipeline_mode<synchronous>, transform_indices = @transform_2, window_bounds = array<i64: 16, 1>}, {transform_indices = @transform_3, window_bounds = array<i64: 16, 128>}]} {
    %c0 = arith.constant 0 : index
    %c0_0 = arith.constant 0 : index
    %0 = vector.load %arg1[%c0, %c0_0] : memref<16x128xbf16, #tpu.memory_space<vmem>>, vector<16x128xbf16>
    %1 = arith.extf %0 : vector<16x128xbf16> to vector<16x128xf32>
    %c0_1 = arith.constant 0 : index
    %c0_2 = arith.constant 0 : index
    %2 = vector.load %arg2[%c0_1, %c0_2] : memref<16x1xf32, #tpu.memory_space<vmem>>, vector<16x1xf32>
    %3 = vector.broadcast %2 : vector<16x1xf32> to vector<16x128xf32>
    %4 = arith.mulf %1, %3 : vector<16x128xf32>
    %c0_3 = arith.constant 0 : index
    %c0_4 = arith.constant 0 : index
    %5 = vector.load %arg3[%c0_3, %c0_4] : memref<16x1xf32, #tpu.memory_space<vmem>>, vector<16x1xf32>
    %6 = vector.broadcast %5 : vector<16x1xf32> to vector<16x128xf32>
    %7 = arith.addf %4, %6 : vector<16x128xf32>
    %cst = arith.constant 0.000000e+00 : f32
    %8 = vector.broadcast %cst : f32 to vector<16x128xf32>
    %9 = arith.maximumf %7, %8 : vector<16x128xf32>
    %10 = arith.truncf %9 : vector<16x128xf32> to vector<16x128xbf16>
    %c0_5 = arith.constant 0 : index
    %c0_6 = arith.constant 0 : index
    %11 = vector.load %arg4[%c0_5, %c0_6] : memref<16x128xbf16, #tpu.memory_space<vmem>>, vector<16x128xbf16>
    tpu.vector_store %arg4[%c0_5, %c0_6], %10 {strides = array<i32>} : memref<16x128xbf16, #tpu.memory_space<vmem>>, vector<16x128xbf16>,
    return
  }
  func.func @transform_0(%arg0: i32) -> (i32, i32) {
    %c0_i32 = arith.constant 0 : i32
    %c0_i32_0 = arith.constant 0 : i32
    return %c0_i32, %arg0 : i32, i32
  }
  func.func @transform_1(%arg0: i32) -> (i32, i32) {
    %c0_i32 = arith.constant 0 : i32
    %c0_i32_0 = arith.constant 0 : i32
    %c0_i32_1 = arith.constant 0 : i32
    return %c0_i32, %c0_i32_0 : i32, i32
  }
  func.func @transform_2(%arg0: i32) -> (i32, i32) {
    %c0_i32 = arith.constant 0 : i32
    %c0_i32_0 = arith.constant 0 : i32
    %c0_i32_1 = arith.constant 0 : i32
    return %c0_i32, %c0_i32_0 : i32, i32
  }
  func.func @transform_3(%arg0: i32) -> (i32, i32) {
    %c0_i32 = arith.constant 0 : i32
    %c0_i32_0 = arith.constant 0 : i32
    return %c0_i32, %arg0 : i32, i32
  }
}

module attributes {stable_mosaic.version = 11 : i64} {
  func.func @_conv_stats_kernel(%arg0: i32, %arg1: memref<32x256xbf16, #tpu.memory_space<vmem>>, %arg2: memref<256x32xbf16, #tpu.memory_space<vmem>>, %arg3: memref<32x32xbf16, #tpu.memory_space<vmem>>, %arg4: memref<1x32x2xf32, #tpu.memory_space<vmem>>) attributes {dimension_semantics = [#tpu.dimension_semantics<parallel>], iteration_bounds = array<i64: 1>, scalar_prefetch = 0 : i64, scratch_operands = 0 : i64, tpu.core_type = #tpu.core_type<tc>, window_params = [{pipeline_mode = #tpu.pipeline_mode<synchronous>, transform_indices = @transform_0, window_bounds = array<i64: 32, 256>}, {transform_indices = @transform_1, window_bounds = array<i64: 256, 32>}, {transform_indices = @transform_2, window_bounds = array<i64: 32, 32>}, {transform_indices = @transform_3, window_bounds = array<i64: 1, 32, 2>}]} {
    %c0 = arith.constant 0 : index
    %c0_0 = arith.constant 0 : index
    %0 = vector.load %arg1[%c0, %c0_0] : memref<32x256xbf16, #tpu.memory_space<vmem>>, vector<32x256xbf16>
    %c0_1 = arith.constant 0 : index
    %c0_2 = arith.constant 0 : index
    %1 = vector.load %arg2[%c0_1, %c0_2] : memref<256x32xbf16, #tpu.memory_space<vmem>>, vector<256x32xbf16>
    %cst = arith.constant dense<0.000000e+00> : vector<32x32xf32>
    %2 = tpu.matmul %0, %1, %cst {dimension_numbers = #tpu.dot_dimension_numbers<[1], [0], [0], [1], [0, 0, 1, 1], [], []>} : vector<32x256xbf16>, vector<256x32xbf16>, vector<32x32xf32> -> vector<32x32xf32>
    %3 = arith.truncf %2 : vector<32x32xf32> to vector<32x32xbf16>
    %c0_3 = arith.constant 0 : index
    %c0_4 = arith.constant 0 : index
    %4 = vector.load %arg3[%c0_3, %c0_4] : memref<32x32xbf16, #tpu.memory_space<vmem>>, vector<32x32xbf16>
    tpu.vector_store %arg3[%c0_3, %c0_4], %3 {strides = array<i32>} : memref<32x32xbf16, #tpu.memory_space<vmem>>, vector<32x32xbf16>,
    %cst_5 = arith.constant dense<0.000000e+00> : vector<32xf32>
    %5 = vector.multi_reduction <add>, %2, %cst_5 [1] : vector<32x32xf32> to vector<32xf32>
    %6 = vector.shape_cast %5 : vector<32xf32> to vector<32x1xf32>
    %7 = arith.mulf %2, %2 : vector<32x32xf32>
    %cst_6 = arith.constant dense<0.000000e+00> : vector<32xf32>
    %8 = vector.multi_reduction <add>, %7, %cst_6 [1] : vector<32x32xf32> to vector<32xf32>
    %9 = vector.shape_cast %8 : vector<32xf32> to vector<32x1xf32>
    %10 = tpu.iota {dimensions = array<i32: 1>} : vector<32x2xi32>
    %c0_i32 = arith.constant 0 : i32
    %11 = vector.broadcast %c0_i32 : i32 to vector<32x2xi32>
    %12 = arith.cmpi eq, %10, %11 : vector<32x2xi32>
    %13 = vector.shape_cast %6 : vector<32x1xf32> to vector<32x1xf32>
    %14 = vector.broadcast %13 : vector<32x1xf32> to vector<32x2xf32>
    %15 = vector.shape_cast %9 : vector<32x1xf32> to vector<32x1xf32>
    %16 = vector.broadcast %15 : vector<32x1xf32> to vector<32x2xf32>
    %17 = arith.select %12, %14, %16 : vector<32x2xi1>, vector<32x2xf32>
    %c0_7 = arith.constant 0 : index
    %c0_8 = arith.constant 0 : index
    %c0_9 = arith.constant 0 : index
    %18 = vector.load %arg4[%c0_7, %c0_8, %c0_9] : memref<1x32x2xf32, #tpu.memory_space<vmem>>, vector<1x32x2xf32>
    %19 = vector.shape_cast %18 : vector<1x32x2xf32> to vector<32x2xf32>
    %20 = vector.shape_cast %17 : vector<32x2xf32> to vector<1x32x2xf32>
    tpu.vector_store %arg4[%c0_7, %c0_8, %c0_9], %20 {strides = array<i32>} : memref<1x32x2xf32, #tpu.memory_space<vmem>>, vector<1x32x2xf32>,
    return
  }
  func.func @transform_0(%arg0: i32) -> (i32, i32) {
    %c0_i32 = arith.constant 0 : i32
    %c0_i32_0 = arith.constant 0 : i32
    %c0_i32_1 = arith.constant 0 : i32
    return %c0_i32, %c0_i32_0 : i32, i32
  }
  func.func @transform_1(%arg0: i32) -> (i32, i32) {
    %c0_i32 = arith.constant 0 : i32
    %c0_i32_0 = arith.constant 0 : i32
    return %c0_i32, %arg0 : i32, i32
  }
  func.func @transform_2(%arg0: i32) -> (i32, i32) {
    %c0_i32 = arith.constant 0 : i32
    %c0_i32_0 = arith.constant 0 : i32
    return %c0_i32, %arg0 : i32, i32
  }
  func.func @transform_3(%arg0: i32) -> (i32, i32, i32) {
    %c0_i32 = arith.constant 0 : i32
    %c0_i32_0 = arith.constant 0 : i32
    %c0_i32_1 = arith.constant 0 : i32
    return %arg0, %c0_i32, %c0_i32_0 : i32, i32, i32
  }
}

module attributes {stable_mosaic.version = 11 : i64} {
  func.func @_bn_relu_kernel(%arg0: i32, %arg1: memref<32x32xbf16, #tpu.memory_space<vmem>>, %arg2: memref<32x1xf32, #tpu.memory_space<vmem>>, %arg3: memref<32x1xf32, #tpu.memory_space<vmem>>, %arg4: memref<32x32xbf16, #tpu.memory_space<vmem>>) attributes {dimension_semantics = [#tpu.dimension_semantics<parallel>], iteration_bounds = array<i64: 1>, scalar_prefetch = 0 : i64, scratch_operands = 0 : i64, tpu.core_type = #tpu.core_type<tc>, window_params = [{transform_indices = @transform_0, window_bounds = array<i64: 32, 32>}, {pipeline_mode = #tpu.pipeline_mode<synchronous>, transform_indices = @transform_1, window_bounds = array<i64: 32, 1>}, {pipeline_mode = #tpu.pipeline_mode<synchronous>, transform_indices = @transform_2, window_bounds = array<i64: 32, 1>}, {transform_indices = @transform_3, window_bounds = array<i64: 32, 32>}]} {
    %c0 = arith.constant 0 : index
    %c0_0 = arith.constant 0 : index
    %0 = vector.load %arg1[%c0, %c0_0] : memref<32x32xbf16, #tpu.memory_space<vmem>>, vector<32x32xbf16>
    %1 = arith.extf %0 : vector<32x32xbf16> to vector<32x32xf32>
    %c0_1 = arith.constant 0 : index
    %c0_2 = arith.constant 0 : index
    %2 = vector.load %arg2[%c0_1, %c0_2] : memref<32x1xf32, #tpu.memory_space<vmem>>, vector<32x1xf32>
    %3 = vector.broadcast %2 : vector<32x1xf32> to vector<32x32xf32>
    %4 = arith.mulf %1, %3 : vector<32x32xf32>
    %c0_3 = arith.constant 0 : index
    %c0_4 = arith.constant 0 : index
    %5 = vector.load %arg3[%c0_3, %c0_4] : memref<32x1xf32, #tpu.memory_space<vmem>>, vector<32x1xf32>
    %6 = vector.broadcast %5 : vector<32x1xf32> to vector<32x32xf32>
    %7 = arith.addf %4, %6 : vector<32x32xf32>
    %cst = arith.constant 0.000000e+00 : f32
    %8 = vector.broadcast %cst : f32 to vector<32x32xf32>
    %9 = arith.maximumf %7, %8 : vector<32x32xf32>
    %10 = arith.truncf %9 : vector<32x32xf32> to vector<32x32xbf16>
    %c0_5 = arith.constant 0 : index
    %c0_6 = arith.constant 0 : index
    %11 = vector.load %arg4[%c0_5, %c0_6] : memref<32x32xbf16, #tpu.memory_space<vmem>>, vector<32x32xbf16>
    tpu.vector_store %arg4[%c0_5, %c0_6], %10 {strides = array<i32>} : memref<32x32xbf16, #tpu.memory_space<vmem>>, vector<32x32xbf16>,
    return
  }
  func.func @transform_0(%arg0: i32) -> (i32, i32) {
    %c0_i32 = arith.constant 0 : i32
    %c0_i32_0 = arith.constant 0 : i32
    return %c0_i32, %arg0 : i32, i32
  }
  func.func @transform_1(%arg0: i32) -> (i32, i32) {
    %c0_i32 = arith.constant 0 : i32
    %c0_i32_0 = arith.constant 0 : i32
    %c0_i32_1 = arith.constant 0 : i32
    return %c0_i32, %c0_i32_0 : i32, i32
  }
  func.func @transform_2(%arg0: i32) -> (i32, i32) {
    %c0_i32 = arith.constant 0 : i32
    %c0_i32_0 = arith.constant 0 : i32
    %c0_i32_1 = arith.constant 0 : i32
    return %c0_i32, %c0_i32_0 : i32, i32
  }
  func.func @transform_3(%arg0: i32) -> (i32, i32) {
    %c0_i32 = arith.constant 0 : i32
    %c0_i32_0 = arith.constant 0 : i32
    return %c0_i32, %arg0 : i32, i32
  }
}

module attributes {stable_mosaic.version = 11 : i64} {
  func.func @_conv_stats_kernel(%arg0: i32, %arg1: memref<64x512xbf16, #tpu.memory_space<vmem>>, %arg2: memref<512x8xbf16, #tpu.memory_space<vmem>>, %arg3: memref<64x8xbf16, #tpu.memory_space<vmem>>, %arg4: memref<1x64x2xf32, #tpu.memory_space<vmem>>) attributes {dimension_semantics = [#tpu.dimension_semantics<parallel>], iteration_bounds = array<i64: 1>, scalar_prefetch = 0 : i64, scratch_operands = 0 : i64, tpu.core_type = #tpu.core_type<tc>, window_params = [{pipeline_mode = #tpu.pipeline_mode<synchronous>, transform_indices = @transform_0, window_bounds = array<i64: 64, 512>}, {transform_indices = @transform_1, window_bounds = array<i64: 512, 8>}, {transform_indices = @transform_2, window_bounds = array<i64: 64, 8>}, {transform_indices = @transform_3, window_bounds = array<i64: 1, 64, 2>}]} {
    %c0 = arith.constant 0 : index
    %c0_0 = arith.constant 0 : index
    %0 = vector.load %arg1[%c0, %c0_0] : memref<64x512xbf16, #tpu.memory_space<vmem>>, vector<64x512xbf16>
    %c0_1 = arith.constant 0 : index
    %c0_2 = arith.constant 0 : index
    %1 = vector.load %arg2[%c0_1, %c0_2] : memref<512x8xbf16, #tpu.memory_space<vmem>>, vector<512x8xbf16>
    %cst = arith.constant dense<0.000000e+00> : vector<64x8xf32>
    %2 = tpu.matmul %0, %1, %cst {dimension_numbers = #tpu.dot_dimension_numbers<[1], [0], [0], [1], [0, 0, 1, 1], [], []>} : vector<64x512xbf16>, vector<512x8xbf16>, vector<64x8xf32> -> vector<64x8xf32>
    %3 = arith.truncf %2 : vector<64x8xf32> to vector<64x8xbf16>
    %c0_3 = arith.constant 0 : index
    %c0_4 = arith.constant 0 : index
    %4 = vector.load %arg3[%c0_3, %c0_4] : memref<64x8xbf16, #tpu.memory_space<vmem>>, vector<64x8xbf16>
    tpu.vector_store %arg3[%c0_3, %c0_4], %3 {strides = array<i32>} : memref<64x8xbf16, #tpu.memory_space<vmem>>, vector<64x8xbf16>,
    %cst_5 = arith.constant dense<0.000000e+00> : vector<64xf32>
    %5 = vector.multi_reduction <add>, %2, %cst_5 [1] : vector<64x8xf32> to vector<64xf32>
    %6 = vector.shape_cast %5 : vector<64xf32> to vector<64x1xf32>
    %7 = arith.mulf %2, %2 : vector<64x8xf32>
    %cst_6 = arith.constant dense<0.000000e+00> : vector<64xf32>
    %8 = vector.multi_reduction <add>, %7, %cst_6 [1] : vector<64x8xf32> to vector<64xf32>
    %9 = vector.shape_cast %8 : vector<64xf32> to vector<64x1xf32>
    %10 = tpu.iota {dimensions = array<i32: 1>} : vector<64x2xi32>
    %c0_i32 = arith.constant 0 : i32
    %11 = vector.broadcast %c0_i32 : i32 to vector<64x2xi32>
    %12 = arith.cmpi eq, %10, %11 : vector<64x2xi32>
    %13 = vector.shape_cast %6 : vector<64x1xf32> to vector<64x1xf32>
    %14 = vector.broadcast %13 : vector<64x1xf32> to vector<64x2xf32>
    %15 = vector.shape_cast %9 : vector<64x1xf32> to vector<64x1xf32>
    %16 = vector.broadcast %15 : vector<64x1xf32> to vector<64x2xf32>
    %17 = arith.select %12, %14, %16 : vector<64x2xi1>, vector<64x2xf32>
    %c0_7 = arith.constant 0 : index
    %c0_8 = arith.constant 0 : index
    %c0_9 = arith.constant 0 : index
    %18 = vector.load %arg4[%c0_7, %c0_8, %c0_9] : memref<1x64x2xf32, #tpu.memory_space<vmem>>, vector<1x64x2xf32>
    %19 = vector.shape_cast %18 : vector<1x64x2xf32> to vector<64x2xf32>
    %20 = vector.shape_cast %17 : vector<64x2xf32> to vector<1x64x2xf32>
    tpu.vector_store %arg4[%c0_7, %c0_8, %c0_9], %20 {strides = array<i32>} : memref<1x64x2xf32, #tpu.memory_space<vmem>>, vector<1x64x2xf32>,
    return
  }
  func.func @transform_0(%arg0: i32) -> (i32, i32) {
    %c0_i32 = arith.constant 0 : i32
    %c0_i32_0 = arith.constant 0 : i32
    %c0_i32_1 = arith.constant 0 : i32
    return %c0_i32, %c0_i32_0 : i32, i32
  }
  func.func @transform_1(%arg0: i32) -> (i32, i32) {
    %c0_i32 = arith.constant 0 : i32
    %c0_i32_0 = arith.constant 0 : i32
    return %c0_i32, %arg0 : i32, i32
  }
  func.func @transform_2(%arg0: i32) -> (i32, i32) {
    %c0_i32 = arith.constant 0 : i32
    %c0_i32_0 = arith.constant 0 : i32
    return %c0_i32, %arg0 : i32, i32
  }
  func.func @transform_3(%arg0: i32) -> (i32, i32, i32) {
    %c0_i32 = arith.constant 0 : i32
    %c0_i32_0 = arith.constant 0 : i32
    %c0_i32_1 = arith.constant 0 : i32
    return %arg0, %c0_i32, %c0_i32_0 : i32, i32, i32
  }
}

module attributes {stable_mosaic.version = 11 : i64} {
  func.func @_bn_relu_kernel(%arg0: i32, %arg1: memref<64x8xbf16, #tpu.memory_space<vmem>>, %arg2: memref<64x1xf32, #tpu.memory_space<vmem>>, %arg3: memref<64x1xf32, #tpu.memory_space<vmem>>, %arg4: memref<64x8xbf16, #tpu.memory_space<vmem>>) attributes {dimension_semantics = [#tpu.dimension_semantics<parallel>], iteration_bounds = array<i64: 1>, scalar_prefetch = 0 : i64, scratch_operands = 0 : i64, tpu.core_type = #tpu.core_type<tc>, window_params = [{transform_indices = @transform_0, window_bounds = array<i64: 64, 8>}, {pipeline_mode = #tpu.pipeline_mode<synchronous>, transform_indices = @transform_1, window_bounds = array<i64: 64, 1>}, {pipeline_mode = #tpu.pipeline_mode<synchronous>, transform_indices = @transform_2, window_bounds = array<i64: 64, 1>}, {transform_indices = @transform_3, window_bounds = array<i64: 64, 8>}]} {
    %c0 = arith.constant 0 : index
    %c0_0 = arith.constant 0 : index
    %0 = vector.load %arg1[%c0, %c0_0] : memref<64x8xbf16, #tpu.memory_space<vmem>>, vector<64x8xbf16>
    %1 = arith.extf %0 : vector<64x8xbf16> to vector<64x8xf32>
    %c0_1 = arith.constant 0 : index
    %c0_2 = arith.constant 0 : index
    %2 = vector.load %arg2[%c0_1, %c0_2] : memref<64x1xf32, #tpu.memory_space<vmem>>, vector<64x1xf32>
    %3 = vector.broadcast %2 : vector<64x1xf32> to vector<64x8xf32>
    %4 = arith.mulf %1, %3 : vector<64x8xf32>
    %c0_3 = arith.constant 0 : index
    %c0_4 = arith.constant 0 : index
    %5 = vector.load %arg3[%c0_3, %c0_4] : memref<64x1xf32, #tpu.memory_space<vmem>>, vector<64x1xf32>
    %6 = vector.broadcast %5 : vector<64x1xf32> to vector<64x8xf32>
    %7 = arith.addf %4, %6 : vector<64x8xf32>
    %cst = arith.constant 0.000000e+00 : f32
    %8 = vector.broadcast %cst : f32 to vector<64x8xf32>
    %9 = arith.maximumf %7, %8 : vector<64x8xf32>
    %10 = arith.truncf %9 : vector<64x8xf32> to vector<64x8xbf16>
    %c0_5 = arith.constant 0 : index
    %c0_6 = arith.constant 0 : index
    %11 = vector.load %arg4[%c0_5, %c0_6] : memref<64x8xbf16, #tpu.memory_space<vmem>>, vector<64x8xbf16>
    tpu.vector_store %arg4[%c0_5, %c0_6], %10 {strides = array<i32>} : memref<64x8xbf16, #tpu.memory_space<vmem>>, vector<64x8xbf16>,
    return
  }
  func.func @transform_0(%arg0: i32) -> (i32, i32) {
    %c0_i32 = arith.constant 0 : i32
    %c0_i32_0 = arith.constant 0 : i32
    return %c0_i32, %arg0 : i32, i32
  }
  func.func @transform_1(%arg0: i32) -> (i32, i32) {
    %c0_i32 = arith.constant 0 : i32
    %c0_i32_0 = arith.constant 0 : i32
    %c0_i32_1 = arith.constant 0 : i32
    return %c0_i32, %c0_i32_0 : i32, i32
  }
  func.func @transform_2(%arg0: i32) -> (i32, i32) {
    %c0_i32 = arith.constant 0 : i32
    %c0_i32_0 = arith.constant 0 : i32
    %c0_i32_1 = arith.constant 0 : i32
    return %c0_i32, %c0_i32_0 : i32, i32
  }
  func.func @transform_3(%arg0: i32) -> (i32, i32) {
    %c0_i32 = arith.constant 0 : i32
    %c0_i32_0 = arith.constant 0 : i32
    return %c0_i32, %arg0 : i32, i32
  }
}

</mosaic_0001>

<bundles_post_ra>
// kernel: bg_encoder_forward.8
= control target key start
LH: loop header
LB: loop body
LE: loop exit
PB: predicated region body
PF: predicated region fallthrough
CT: control target
= control target key end

     0   :  { %s691_s20 = smov 0   ;;  %s693_s21 = smov 0   ;;  %s738_s0 = inlined_call_operand.vmem [shape: f32[2,3,256], index: 0, kind: input, shape index: {}]   ;;  %s739_s1 = inlined_call_operand.vmem [shape: f32[2,1,256], index: 1, kind: input, shape index: {}]   ;;  %s740_s2 = inlined_call_operand.vmem [shape: f32[2,3,256], index: 2, kind: input, shape index: {}]   ;;  %s741_s3 = inlined_call_operand.<no memory space> [shape: f32[1], index: 3, kind: input, shape index: {}]   ;;  %s742_s4 = inlined_call_operand.vmem [shape: bf16[2,3,256], index: 4, kind: output, shape index: {0}]   ;;  %s743_s5 = inlined_call_operand.vmem [shape: f32[2,3,256], index: 5, kind: output, shape index: {1}]  }
   0x1   :  { %11 = sst [smem:[#allocation2]] %s741_s3  ;;  %s695_s22 = smov 0  }
   0x2 LB: > { %s29_s3 = sadd.s32 1, %s651_s21  ;;  %p591_p0 = scmp.ge.s32.totalorder %s655_s22, 1  ;;  %s655_s22 = sphi %s695_s22, %s17_s22   ;;  %s651_s21 = sphi %s693_s21, %s745_s21   ;;  %s647_s20 = sphi %s691_s20, %s744_s20  }
   0x3   : > { %p31_p1 = scmp.ge.s32.totalorder %s29_s3, 2  ;;  %p247_p2 = scmp.lt.s32.totalorder %s655_s22, 3 }
   0x5   : > { %s747_s3 = smov (%p31_p1, %s29_s3), 0  ;;  %p248_p3 = pnand %p591_p0, %p247_p2 }
   0x6   : > { %p310_p4 = scmp.lt.s32.totalorder (!%p248_p3), %s647_s20, 1  ;;  %v361_v0 = vlaneseq (!%p248_p3)  ;;  %s386_s23 = sld [smem:[#allocation2]] (!%p248_p3)  ;;  %v657_v15 = vmov (!%p248_p3), 1983009808   ;;  %vm406_vm0 = vcmask (!%p248_p3), 1041408   ;;  %vm409_vm2 = vcmask (!%p248_p3), 1043458  }
   0x7   : > { %251 = sbr.rel (%p248_p3) target bundleno = 38 (0x26), region = 36  ;;  %v399_v16 = vunpack.c.l.s4 (!%p248_p3), %v657_v15  ;;  %vm407_vm1 = vsmask.f32 (!%p248_p3), 1280  ;;  %vm410_vm3 = vsmask.f32 (!%p248_p3), 3328 }
   0x8   : > { %v362_v1 = vshrl.u32 (!%p248_p3), %v361_v0, 7  ;;  %vm408_vm4 = vmand (!%p248_p3), %vm406_vm0, %vm407_vm1 }
   0x9   : > { %v400_v20 = vunpack.c.0.s8 (!%p248_p3), %v399_v16  ;;  %vm411_vm5 = vmand (!%p248_p3), %vm409_vm2, %vm410_vm3 }
   0xa   : > { %v363_v2 = vsub.s32 (!%p248_p3), 0, %v362_v1  ;;  %v367_v3 = vsub.s32 (!%p248_p3), 1, %v362_v1  ;;  %vm412_vm6 = vmor (!%p248_p3), %vm411_vm5, %vm408_vm4 }
   0xb   : > { %v403_v23 = vsub.s32 (!%p248_p3), %v400_v20, %v362_v1 }
   0xc   : > { %v387_v17 = vstv (!%p248_p3), %s386_s23 }
   0xe   : > { %s749_s20 = smov (!%p310_p4, %s647_s20), 1 }
   0xf   : > { %s604_s24 = sshll.u32 %s749_s20, 3  ;;  %s594_s25 = sshll.u32 %s749_s20, 1 }
  0x10   : > { %s326_s28 = scalar_lea.vmem %s739_s1, %s594_s25  ;;  %s336_s6 = scalar_lea.vmem %s740_s2, %s604_s24 }
  0x11   : > { %v358_v4 = vld [vmem:[%s326_s28] sm:$0x3]  ;;  %s317_s9 = scalar_lea.vmem %s738_s0, %s604_s24  ;;  %s356_s12 = scalar_lea.vmem %s743_s5, %s604_s24 }
  0x12   : > { %v364_v5 = vrot.slane %v358_v4, %v363_v2  ;;  %v368_v6 = vrot.slane %v358_v4, %v367_v3  ;;  %v373_v7 = vsub.f32 1.0, %v358_v4  ;;  %v359_v8 = vld [vmem:[%s336_s6] sm:$0x77]  ;;  %s606_s13 = sshll.u32 %s749_s20, 2 }
  0x13   : > { %v372_v12 = vld [vmem:[%s317_s9] sm:$0x77]  ;;  %s346_s16 = scalar_lea.vmem %s742_s4, %s606_s13 }
  0x14   : > { %v369_v9 = vcombine.low %v364_v5, %v368_v6  ;;  %v378_v10 = vrot.slane %v373_v7, %v363_v2  ;;  %v382_v11 = vrot.slane %v373_v7, %v367_v3  ;;  %v413_v25 = vld [vmem:[%s346_s16] sm:$0xf] }
  0x16   : > { %v371_v13 = vmul.f32 %v369_v9, %v359_v8  ;;  %v383_v14 = vcombine.low %v378_v10, %v382_v11 }
  0x18   : > { %v385_v18 = vmul.f32 %v383_v14, %v372_v12  ;;  %416 = vst [vmem:[%s356_s12] sm:$0x77] %v371_v13 }
  0x1a   : > { %v388_v19 = vmul.f32 %v387_v17, %v385_v18 }
  0x1c   : > { %v389_v21 = vadd.f32 %v388_v19, %v371_v13 }
  0x1e   : > { %v391_v22 = vcombine.high %v389_v21, %v389_v21 }
  0x20   : > { %v601_v24 = vpack.c.bf16 %v391_v22, %v389_v21 }
  0x22   : > { %v404_v26 = vrot.slane %v601_v24, %v403_v23 }
  0x24   : > { %v414_v27 = vsel %vm412_vm6, %v404_v26, %v413_v25 }
  0x25   : > { %415 = vst [vmem:[%s346_s16] sm:$0xf] %v414_v27 }
  0x26 PF: > { %s17_s22 = sadd.s32 1, %s655_s22   ;;  %s744_s20 = smov %s651_s21 }
  0x27   : > { %p14_p5 = scmp.ge.s32.totalorder %s17_s22, 4   ;;  %s745_s21 = smov %s747_s3 }
  0x29   :  { %16 = sbr.rel (!%p14_p5) target bundleno = 2 (0x2), region = 84 }

// kernel: bg_encoder_forward.9
= control target key start
LH: loop header
LB: loop body
LE: loop exit
PB: predicated region body
PF: predicated region fallthrough
CT: control target
= control target key end

     0   :  { %v690_v1 = vmov 0   ;;  %s915_s1 = inlined_call_operand.vmem [shape: bf16[256,512], index: 1, kind: input, shape index: {}]   ;;  %s916_s0 = inlined_call_operand.vmem [shape: bf16[8,256], index: 0, kind: input, shape index: {}]   ;;  %s917_s2 = inlined_call_operand.vmem [shape: f32[8,1], index: 2, kind: input, shape index: {}]   ;;  %s918_s3 = inlined_call_operand.vmem [shape: bf16[8,512], index: 3, kind: output, shape index: {}]  }
   0x1   :  { %v592_v0 = vld [vmem:[%s915_s1 + $0x4] ss:$16 sps:$4 sm:$0xff]   ;;  %591 = vset.pattern.permute.xlu0 %v690_v1  ;;  %v594_v2 = vld [vmem:[%s915_s1 + $0xc] ss:$16 sps:$4 sm:$0xff]   ;;  %v596_v3 = vld [vmem:[%s915_s1] ss:$16 sps:$4 sm:$0xff]  }
   0x2   :  { %412 = vmatprep.subr.bf16.mxu0 %v592_v0  ;;  %v597_v4 = vld [vmem:[%s915_s1 + $0x8] ss:$16 sps:$4 sm:$0xff]   ;;  %453 = vmatprep.subr.bf16.mxu1 %v594_v2  ;;  %v598_v5 = vld [vmem:[%s915_s1 + $0x24] ss:$16 sps:$4 sm:$0xff]   ;;  %v600_v6 = vld [vmem:[%s915_s1 + $0x2c] ss:$16 sps:$4 sm:$0xff]  }
   0x3   :  { %413 = vmatpush1.bf16.msra.mxu0 %v596_v3  ;;  %454 = vmatpush1.bf16.msra.mxu1 %v597_v4  ;;  %v602_v7 = vld [vmem:[%s915_s1 + $0x20] ss:$16 sps:$4 sm:$0xff]   ;;  %v603_v8 = vld [vmem:[%s915_s1 + $0x28] ss:$16 sps:$4 sm:$0xff]   ;;  %v604_v9 = vld [vmem:[%s915_s1 + $0x44] ss:$16 sps:$4 sm:$0xff]  }
   0x4   :  { %414 = vmatprep.subr.bf16.mxu0 %v598_v5  ;;  %455 = vmatprep.subr.bf16.mxu1 %v600_v6  ;;  %v606_v10 = vld [vmem:[%s915_s1 + $0x4c] ss:$16 sps:$4 sm:$0xff]   ;;  %v608_v11 = vld [vmem:[%s915_s1 + $0x40] ss:$16 sps:$4 sm:$0xff]   ;;  %v609_v12 = vld [vmem:[%s915_s1 + $0x48] ss:$16 sps:$4 sm:$0xff]  }
   0x5   :  { %v610_v13 = vld [vmem:[%s915_s1 + $0x64] ss:$16 sps:$4 sm:$0xff]   ;;  %v612_v14 = vld [vmem:[%s915_s1 + $0x6c] ss:$16 sps:$4 sm:$0xff]   ;;  %v614_v15 = vld [vmem:[%s915_s1 + $0x60] ss:$16 sps:$4 sm:$0xff]  }
   0x6   :  { %v615_v16 = vld [vmem:[%s915_s1 + $0x68] ss:$16 sps:$4 sm:$0xff]   ;;  %v616_v17 = vld [vmem:[%s915_s1 + $0x84] ss:$16 sps:$4 sm:$0xff]   ;;  %v618_v18 = vld [vmem:[%s915_s1 + $0x8c] ss:$16 sps:$4 sm:$0xff]  }
   0x7   :  { %415 = vmatpush1.bf16.msra.mxu0 %v602_v7  ;;  %456 = vmatpush1.bf16.msra.mxu1 %v603_v8  ;;  %v620_v19 = vld [vmem:[%s915_s1 + $0x80] ss:$16 sps:$4 sm:$0xff]   ;;  %v621_v20 = vld [vmem:[%s915_s1 + $0x88] ss:$16 sps:$4 sm:$0xff]   ;;  %v622_v21 = vld [vmem:[%s915_s1 + $0xa4] ss:$16 sps:$4 sm:$0xff]  }
   0x8   :  { %416 = vmatprep.subr.bf16.mxu0 %v604_v9  ;;  %457 = vmatprep.subr.bf16.mxu1 %v606_v10  ;;  %v624_v22 = vld [vmem:[%s915_s1 + $0xac] ss:$16 sps:$4 sm:$0xff]   ;;  %v626_v23 = vld [vmem:[%s915_s1 + $0xa0] ss:$16 sps:$4 sm:$0xff]   ;;  %v627_v24 = vld [vmem:[%s915_s1 + $0xa8] ss:$16 sps:$4 sm:$0xff]  }
   0x9   :  { %v628_v25 = vld [vmem:[%s915_s1 + $0xc4] ss:$16 sps:$4 sm:$0xff]   ;;  %v630_v26 = vld [vmem:[%s915_s1 + $0xcc] ss:$16 sps:$4 sm:$0xff]   ;;  %v632_v27 = vld [vmem:[%s915_s1 + $0xc0] ss:$16 sps:$4 sm:$0xff]  }
   0xa   :  { %v633_v28 = vld [vmem:[%s915_s1 + $0xc8] ss:$16 sps:$4 sm:$0xff]   ;;  %v634_v29 = vld [vmem:[%s915_s1 + $0xe4] ss:$16 sps:$4 sm:$0xff]   ;;  %v636_v30 = vld [vmem:[%s915_s1 + $0xec] ss:$16 sps:$4 sm:$0xff]  }
   0xb   :  { %417 = vmatpush1.bf16.msra.mxu0 %v608_v11  ;;  %458 = vmatpush1.bf16.msra.mxu1 %v609_v12  ;;  %v638_v31 = vld [vmem:[%s915_s1 + $0xe0] ss:$16 sps:$4 sm:$0xff]   ;;  %v639_v32 = vld [vmem:[%s915_s1 + $0xe8] ss:$16 sps:$4 sm:$0xff]   ;;  %v640_v33 = vld [vmem:[%s915_s1 + $0x104] ss:$16 sps:$4 sm:$0xff]  }
   0xc   :  { %418 = vmatprep.subr.bf16.mxu0 %v610_v13  ;;  %459 = vmatprep.subr.bf16.mxu1 %v612_v14  ;;  %v642_v34 = vld [vmem:[%s915_s1 + $0x10c] ss:$16 sps:$4 sm:$0xff]   ;;  %v644_v35 = vld [vmem:[%s915_s1 + $0x100] ss:$16 sps:$4 sm:$0xff]   ;;  %v645_v36 = vld [vmem:[%s915_s1 + $0x108] ss:$16 sps:$4 sm:$0xff]  }
   0xd   :  { %v646_v37 = vld [vmem:[%s915_s1 + $0x124] ss:$16 sps:$4 sm:$0xff]   ;;  %v648_v38 = vld [vmem:[%s915_s1 + $0x12c] ss:$16 sps:$4 sm:$0xff]   ;;  %v650_v39 = vld [vmem:[%s915_s1 + $0x120] ss:$16 sps:$4 sm:$0xff]  }
   0xe   :  { %v651_v40 = vld [vmem:[%s915_s1 + $0x128] ss:$16 sps:$4 sm:$0xff]   ;;  %v652_v41 = vld [vmem:[%s915_s1 + $0x144] ss:$16 sps:$4 sm:$0xff]   ;;  %v654_v42 = vld [vmem:[%s915_s1 + $0x14c] ss:$16 sps:$4 sm:$0xff]  }
   0xf   :  { %419 = vmatpush1.bf16.msra.mxu0 %v614_v15  ;;  %460 = vmatpush1.bf16.msra.mxu1 %v615_v16  ;;  %v656_v43 = vld [vmem:[%s915_s1 + $0x140] ss:$16 sps:$4 sm:$0xff]   ;;  %v657_v44 = vld [vmem:[%s915_s1 + $0x148] ss:$16 sps:$4 sm:$0xff]   ;;  %v658_v45 = vld [vmem:[%s915_s1 + $0x164] ss:$16 sps:$4 sm:$0xff]  }
  0x10   :  { %420 = vmatprep.subr.bf16.mxu0 %v616_v17  ;;  %461 = vmatprep.subr.bf16.mxu1 %v618_v18  ;;  %v660_v46 = vld [vmem:[%s915_s1 + $0x16c] ss:$16 sps:$4 sm:$0xff]   ;;  %v14_v47 = vld [vmem:[%s916_s0] sm:$0xff]  ;;  %v663_v50 = vld [vmem:[%s915_s1 + $0x168] ss:$16 sps:$4 sm:$0xff]  }
  0x11   :  { %v521_v48 = vcombine.high %v14_v47, %v14_v47  ;;  %v662_v49 = vld [vmem:[%s915_s1 + $0x160] ss:$16 sps:$4 sm:$0xff]   ;;  %v664_v52 = vld [vmem:[%s915_s1 + $0x184] ss:$16 sps:$4 sm:$0xff]   ;;  %v666_v53 = vld [vmem:[%s915_s1 + $0x18c] ss:$16 sps:$4 sm:$0xff]   ;;  %v520_v4 = vcombine.low %v14_v47, %v14_v47 }
  0x12   :  { %v79_v51 = vld [vmem:[%s917_s2] sm:$0xff]  ;;  %v669_v55 = vld [vmem:[%s915_s1 + $0x188] ss:$16 sps:$4 sm:$0xff]   ;;  %v672_v57 = vld [vmem:[%s915_s1 + $0x1ac] ss:$16 sps:$4 sm:$0xff]  }
  0x13   :  { %421 = vmatpush1.bf16.msra.mxu0 %v620_v19  ;;  %462 = vmatpush1.bf16.msra.mxu1 %v621_v20  ;;  %v668_v54 = vld [vmem:[%s915_s1 + $0x180] ss:$16 sps:$4 sm:$0xff]   ;;  %v670_v56 = vld [vmem:[%s915_s1 + $0x1a4] ss:$16 sps:$4 sm:$0xff]   ;;  %v675_v59 = vld [vmem:[%s915_s1 + $0x1a8] ss:$16 sps:$4 sm:$0xff]  }
  0x14   :  { %422 = vmatprep.subr.bf16.mxu0 %v622_v21  ;;  %463 = vmatprep.subr.bf16.mxu1 %v624_v22  ;;  %v674_v58 = vld [vmem:[%s915_s1 + $0x1a0] ss:$16 sps:$4 sm:$0xff]   ;;  %v676_v60 = vld [vmem:[%s915_s1 + $0x1c4] ss:$16 sps:$4 sm:$0xff]   ;;  %v678_v61 = vld [vmem:[%s915_s1 + $0x1cc] ss:$16 sps:$4 sm:$0xff]  }
  0x15   :  { %444 = vmatprep.mubr.bf16.mxu0 %v521_v48  ;;  %485 = vmatprep.mubr.bf16.mxu1 %v521_v48  ;;  %v680_v62 = vld [vmem:[%s915_s1 + $0x1c0] ss:$16 sps:$4 sm:$0xff]   ;;  %v681_v63 = vld [vmem:[%s915_s1 + $0x1c8] ss:$16 sps:$4 sm:$0xff]   ;;  %v682_v0 = vld [vmem:[%s915_s1 + $0x1e4] ss:$16 sps:$4 sm:$0xff]  }
  0x16   :  { %82 = vperm.xlu0 %591, %v79_v51   ;;  %v684_v1 = vld [vmem:[%s915_s1 + $0x1ec] ss:$16 sps:$4 sm:$0xff]   ;;  %v686_v2 = vld [vmem:[%s915_s1 + $0x1e0] ss:$16 sps:$4 sm:$0xff]   ;;  %v687_v3 = vld [vmem:[%s915_s1 + $0x1e8] ss:$16 sps:$4 sm:$0xff]  }
  0x17   :  { %423 = vmatpush1.bf16.msra.mxu0 %v626_v23  ;;  %464 = vmatpush1.bf16.msra.mxu1 %v627_v24 }
  0x18   :  { %424 = vmatprep.subr.bf16.mxu0 %v628_v25  ;;  %465 = vmatprep.subr.bf16.mxu1 %v630_v26 }
  0x1b   :  { %425 = vmatpush1.bf16.msra.mxu0 %v632_v27  ;;  %466 = vmatpush1.bf16.msra.mxu1 %v633_v28 }
  0x1c   :  { %426 = vmatprep.subr.bf16.mxu0 %v634_v29  ;;  %467 = vmatprep.subr.bf16.mxu1 %v636_v30 }
  0x1f   :  { %427 = vmatpush1.bf16.msra.mxu0 %v638_v31  ;;  %468 = vmatpush1.bf16.msra.mxu1 %v639_v32 }
  0x20   :  { %428 = vmatprep.subr.bf16.mxu0 %v640_v33  ;;  %469 = vmatprep.subr.bf16.mxu1 %v642_v34 }
  0x23   :  { %429 = vmatpush1.bf16.msra.mxu0 %v644_v35  ;;  %470 = vmatpush1.bf16.msra.mxu1 %v645_v36 }
  0x24   :  { %430 = vmatprep.subr.bf16.mxu0 %v646_v37  ;;  %471 = vmatprep.subr.bf16.mxu1 %v648_v38 }
  0x27   :  { %431 = vmatpush1.bf16.msra.mxu0 %v650_v39  ;;  %472 = vmatpush1.bf16.msra.mxu1 %v651_v40 }
  0x28   :  { %432 = vmatprep.subr.bf16.mxu0 %v652_v41  ;;  %473 = vmatprep.subr.bf16.mxu1 %v654_v42 }
  0x2b   :  { %433 = vmatpush1.bf16.msra.mxu0 %v656_v43  ;;  %474 = vmatpush1.bf16.msra.mxu1 %v657_v44 }
  0x2c   :  { %434 = vmatprep.subr.bf16.mxu0 %v658_v45  ;;  %475 = vmatprep.subr.bf16.mxu1 %v660_v46 }
  0x2f   :  { %435 = vmatpush1.bf16.msra.mxu0 %v662_v49  ;;  %476 = vmatpush1.bf16.msra.mxu1 %v663_v50 }
  0x30   :  { %436 = vmatprep.subr.bf16.mxu0 %v664_v52  ;;  %477 = vmatprep.subr.bf16.mxu1 %v666_v53 }
  0x33   :  { %437 = vmatpush1.bf16.msra.mxu0 %v668_v54  ;;  %478 = vmatpush1.bf16.msra.mxu1 %v669_v55 }
  0x34   :  { %438 = vmatprep.subr.bf16.mxu0 %v670_v56  ;;  %479 = vmatprep.subr.bf16.mxu1 %v672_v57 }
  0x37   :  { %439 = vmatpush1.bf16.msra.mxu0 %v674_v58  ;;  %480 = vmatpush1.bf16.msra.mxu1 %v675_v59 }
  0x38   :  { %440 = vmatprep.subr.bf16.mxu0 %v676_v60  ;;  %481 = vmatprep.subr.bf16.mxu1 %v678_v61 }
  0x3b   :  { %441 = vmatpush1.bf16.msra.mxu0 %v680_v62  ;;  %482 = vmatpush1.bf16.msra.mxu1 %v681_v63 }
  0x3c   :  { %442 = vmatprep.subr.bf16.mxu0 %v682_v0  ;;  %483 = vmatprep.subr.bf16.mxu1 %v684_v1 }
  0x3f   :  { %443 = vmatpush1.bf16.msra.mxu0 %v686_v2  ;;  %484 = vmatpush1.bf16.msra.mxu1 %v687_v3 }
  0x42   :  { %445 = vmatmul.mubr.bf16.vlgmr.msra.gmra.mrb[0].mxu0 %v520_v4  ;;  %486 = vmatmul.mubr.bf16.vlgmr.msra.gmra.mrb[0].mxu1 %v520_v4 }
  0x95   :  { %v83_v5 = vpop.permute.xlu0 %82 }
 0x115   :  { %v446_v6 = vpop.f32.mrb[0].mxu0  ;;  %v487_v7 = vpop.f32.mrb[0].mxu1 }
 0x116   :  { %v447_v8 = vadd.f32 %v446_v6, %v83_v5  ;;  %v488_v9 = vadd.f32 %v487_v7, %v83_v5  ;;  %v448_v10 = vpop.f32.mrb[1].mxu0  ;;  %v489_v11 = vpop.f32.mrb[1].mxu1 }
 0x117   :  { %v449_v12 = vadd.f32 %v448_v10, %v83_v5  ;;  %v490_v13 = vadd.f32 %v489_v11, %v83_v5  ;;  %v450_v14 = vpop.f32.mrb[2].mxu0  ;;  %v491_v15 = vpop.f32.mrb[2].mxu1 }
 0x118   :  { %v494_v16 = vmax.f32 %v447_v8, 0.0  ;;  %v496_v17 = vmax.f32 %v488_v9, 0.0  ;;  %v451_v18 = vpop.f32.mrb[3].mxu0  ;;  %v492_v19 = vpop.f32.mrb[3].mxu1 }
 0x119   :  { %v495_v20 = vmax.f32 %v449_v12, 0.0  ;;  %v497_v21 = vmax.f32 %v490_v13, 0.0 }
 0x11b   :  { %v588_v22 = vpack.c.bf16 %v495_v20, %v494_v16  ;;  %v589_v23 = vpack.c.bf16 %v497_v21, %v496_v17 }
 0x11d   :  { %514 = vst [vmem:[%s918_s3] sm:$0xff] %v588_v22  ;;  %515 = vst [vmem:[%s918_s3 + $0x8] sm:$0xff] %v589_v23 }

// kernel: bg_encoder_forward.10
= control target key start
LH: loop header
LB: loop body
LE: loop exit
PB: predicated region body
PF: predicated region fallthrough
CT: control target
= control target key end

     0   :  { %v221_v0 = vmov 0.0   ;;  %vm222_vm0 = vmmov 0   ;;  %v147_v17 = vlaneseq  ;;  %vm152_vm2 = vcmask 15360   ;;  %s279_s1 = inlined_call_operand.vmem [shape: bf16[128,128], index: 1, kind: input, shape index: {}]   ;;  %s280_s0 = inlined_call_operand.vmem [shape: bf16[16,128], index: 0, kind: input, shape index: {}]   ;;  %s281_s2 = inlined_call_operand.vmem [shape: bf16[16,128], index: 2, kind: output, shape index: {0}]   ;;  %s282_s3 = inlined_call_operand.vmem [shape: f32[1,16,2], index: 3, kind: output, shape index: {1}]  }
   0x1   :  { %190 = vmatprep.subr.bf16.mxu0 %v221_v0  ;;  %v212_v1 = vld [vmem:[%s279_s1] sm:$0xff]   ;;  %206 = vmatprep.mubr.msk.bf16.mxu0 %vm222_vm0, %v221_v0  ;;  %v213_v2 = vld [vmem:[%s279_s1 + $0x8] sm:$0xff]   ;;  %v214_v3 = vld [vmem:[%s279_s1 + $0x10] sm:$0xff]  }
   0x2   :  { %191 = vmatpush3.bf16.msra.mxu0 %v212_v1  ;;  %v215_v4 = vld [vmem:[%s279_s1 + $0x18] sm:$0xff]   ;;  %v216_v5 = vld [vmem:[%s279_s1 + $0x20] sm:$0xff]   ;;  %v217_v6 = vld [vmem:[%s279_s1 + $0x28] sm:$0xff]   ;;  %v148_v18 = vand.u32 127, %v147_v17 }
   0x3   :  { %192 = vmatprep.subr.bf16.mxu0 %v221_v0  ;;  %v218_v7 = vld [vmem:[%s279_s1 + $0x30] sm:$0xff]   ;;  %v219_v8 = vld [vmem:[%s279_s1 + $0x38] sm:$0xff]   ;;  %v220_v9 = vld [vmem:[%s280_s0] sm:$0xff]  }
   0x4   :  { %vm149_vm1 = vcmp.eq.s32.totalorder %v148_v18, 0 }
   0x6   :  { %193 = vmatpush3.bf16.msra.mxu0 %v213_v2 }
   0x7   :  { %194 = vmatprep.subr.bf16.mxu0 %v221_v0 }
   0xa   :  { %195 = vmatpush3.bf16.msra.mxu0 %v214_v3 }
   0xb   :  { %196 = vmatprep.subr.bf16.mxu0 %v221_v0 }
   0xe   :  { %197 = vmatpush3.bf16.msra.mxu0 %v215_v4 }
   0xf   :  { %198 = vmatprep.subr.bf16.mxu0 %v221_v0 }
  0x12   :  { %199 = vmatpush3.bf16.msra.mxu0 %v216_v5 }
  0x13   :  { %200 = vmatprep.subr.bf16.mxu0 %v221_v0 }
  0x16   :  { %201 = vmatpush3.bf16.msra.mxu0 %v217_v6 }
  0x17   :  { %202 = vmatprep.subr.bf16.mxu0 %v221_v0 }
  0x1a   :  { %203 = vmatpush3.bf16.msra.mxu0 %v218_v7 }
  0x1b   :  { %204 = vmatprep.subr.bf16.mxu0 %v221_v0 }
  0x1e   :  { %205 = vmatpush3.bf16.msra.mxu0 %v219_v8 }
  0x21   :  { %207 = vmatmul.mubr.bf16.vlgmr.msra.gmra.mrb[0].mxu0 %v220_v9 }
  0xf4   :  { %v120_v10 = vpop.f32.mrb[0].mxu0 }
  0xf5   :  { %137 = vadd.xlane.f32.xlu0 %v120_v10  ;;  %v208_v11 = vpop.f32.mrb[1].mxu0  ;;  %v141_v12 = vmul.f32 %v120_v10, %v120_v10 }
  0xf6   :  { %v123_v13 = vpop.f32.mrb[2].mxu0 }
  0xf7   :  { %v179_v14 = vpack.c.bf16 %v123_v13, %v120_v10  ;;  %143 = vadd.xlane.f32.xlu1 %v141_v12  ;;  %v209_v15 = vpop.f32.mrb[3].mxu0  ;;  %v142_v16 = vmul.f32 %v123_v13, %v123_v13 }
  0xf9   :  { %180 = vst [vmem:[%s281_s2] sm:$0xff] %v179_v14   ;;  %139 = vadd.xlane.f32.xlu0 %v123_v13 }
  0xfb   :  { %145 = vadd.xlane.f32.xlu1 %v142_v16 }
 0x182   :  { %v138_v19 = vpop.xlane.xlu0 %137 }
 0x184   :  { %v144_v20 = vpop.xlane.xlu1 %143 }
 0x185   :  { %v150_v21 = vsel %vm149_vm1, %v138_v19, %v144_v20 }
 0x186   :  { %153 = vst.msk [vmem:[%s282_s3] sm:$0xff] %vm152_vm2, %v150_v21  ;;  %v140_v22 = vpop.xlane.xlu0 %139 }
 0x188   :  { %v146_v23 = vpop.xlane.xlu1 %145 }
 0x189   :  { %v151_v24 = vsel %vm149_vm1, %v140_v22, %v146_v23 }
 0x18a   :  { %154 = vst.msk [vmem:[%s282_s3 + $0x8] sm:$0xff] %vm152_vm2, %v151_v24 }

// kernel: bg_encoder_forward.11
= control target key start
LH: loop header
LB: loop body
LE: loop exit
PB: predicated region body
PF: predicated region fallthrough
CT: control target
= control target key end

     0   :  { %v78_v0 = vmov 0   ;;  %s117_s2 = inlined_call_operand.vmem [shape: f32[16,1], index: 2, kind: input, shape index: {}]   ;;  %s118_s1 = inlined_call_operand.vmem [shape: f32[16,1], index: 1, kind: input, shape index: {}]   ;;  %s119_s0 = inlined_call_operand.vmem [shape: bf16[16,128], index: 0, kind: input, shape index: {}]   ;;  %s120_s3 = inlined_call_operand.vmem [shape: bf16[16,128], index: 3, kind: output, shape index: {}]  }
   0x1   :  { %77 = vset.pattern.permute.xlu1 %v78_v0  ;;  %76 = vset.pattern.permute.xlu0 %v78_v0  ;;  %v32_v1 = vld [vmem:[%s117_s2] sm:$0xff]  ;;  %v33_v3 = vld [vmem:[%s117_s2 + $0x8] sm:$0xff] }
   0x2   :  { %v18_v2 = vld [vmem:[%s118_s1] sm:$0xff]  ;;  %36 = vperm.xlu1 %77, %v32_v1   ;;  %v19_v4 = vld [vmem:[%s118_s1 + $0x8] sm:$0xff] }
   0x3   :  { %22 = vperm.xlu0 %76, %v18_v2   ;;  %v67_v5 = vld [vmem:[%s119_s0] sm:$0xff]  }
   0x4   :  { %v68_v6 = vunpack.c.l.bf16 %v67_v5  ;;  %v69_v10 = vunpack.c.h.bf16 %v67_v5 }
   0x6   :  { %41 = vperm.xlu1 %77, %v33_v3  }
   0x7   :  { %27 = vperm.xlu0 %76, %v19_v4  }
  0x81   :  { %v37_v7 = vpop.permute.xlu1 %36 }
  0x82   :  { %v23_v8 = vpop.permute.xlu0 %22 }
  0x83   :  { %v30_v9 = vmul.f32 %v68_v6, %v23_v8 }
  0x85   :  { %v44_v12 = vadd.f32 %v37_v7, %v30_v9  ;;  %v42_v14 = vpop.permute.xlu1 %41 }
  0x86   :  { %v28_v11 = vpop.permute.xlu0 %27 }
  0x87   :  { %v31_v13 = vmul.f32 %v69_v10, %v28_v11  ;;  %v46_v16 = vmax.f32 %v44_v12, 0.0 }
  0x89   :  { %v45_v15 = vadd.f32 %v42_v14, %v31_v13 }
  0x8b   :  { %v47_v17 = vmax.f32 %v45_v15, 0.0 }
  0x8d   :  { %v73_v18 = vpack.c.bf16 %v47_v17, %v46_v16 }
  0x8f   :  { %74 = vst [vmem:[%s120_s3] sm:$0xff] %v73_v18  }

// kernel: bg_encoder_forward.12
= control target key start
LH: loop header
LB: loop body
LE: loop exit
PB: predicated region body
PF: predicated region fallthrough
CT: control target
= control target key end

     0   :  { %vm236_vm0 = vcmask 261120   ;;  %vm231_vm1 = vcmask 257024   ;;  %v265_v48 = vlaneseq  ;;  %vm272_vm3 = vcmask 15360   ;;  %s495_s1 = inlined_call_operand.vmem [shape: bf16[256,32], index: 1, kind: input, shape index: {}]   ;;  %s496_s0 = inlined_call_operand.vmem [shape: bf16[32,256], index: 0, kind: input, shape index: {}]   ;;  %s497_s2 = inlined_call_operand.vmem [shape: bf16[32,32], index: 2, kind: output, shape index: {0}]   ;;  %s498_s3 = inlined_call_operand.vmem [shape: f32[1,32,2], index: 3, kind: output, shape index: {1}]  }
   0x1   :  { %v357_v0 = vld [vmem:[%s495_s1 + $0x40] sm:$0xff]   ;;  %v359_v2 = vld [vmem:[%s495_s1 + $0x48] sm:$0xff]   ;;  %v361_v4 = vld [vmem:[%s495_s1 + $0x50] sm:$0xff]  }
   0x2   :  { %v358_v1 = vld [vmem:[%s495_s1] sm:$0xff]   ;;  %313 = vmatprep.subr.bf16.mxu0 %v357_v0  ;;  %341 = vmatprep.subr.bf16.mxu1 %v357_v0  ;;  %v360_v3 = vld [vmem:[%s495_s1 + $0x8] sm:$0xff]   ;;  %v362_v5 = vld [vmem:[%s495_s1 + $0x10] sm:$0xff]   ;;  %v266_v51 = vand.u32 127, %v265_v48 }
   0x3   :  { %314 = vmatpush3.bf16.msra.mxu0 %v358_v1  ;;  %349 = vmatpush3.bf16.msra.mxu1 %v358_v1  ;;  %v363_v6 = vld [vmem:[%s495_s1 + $0x58] sm:$0xff]   ;;  %v365_v8 = vld [vmem:[%s495_s1 + $0x60] sm:$0xff]   ;;  %v367_v10 = vld [vmem:[%s495_s1 + $0x68] sm:$0xff]  }
   0x4   :  { %315 = vmatprep.subr.bf16.mxu0 %v359_v2  ;;  %342 = vmatprep.subr.bf16.mxu1 %v359_v2  ;;  %v364_v7 = vld [vmem:[%s495_s1 + $0x18] sm:$0xff]   ;;  %v366_v9 = vld [vmem:[%s495_s1 + $0x20] sm:$0xff]   ;;  %v368_v13 = vld [vmem:[%s495_s1 + $0x28] sm:$0xff]   ;;  %vm267_vm2 = vcmp.eq.s32.totalorder %v266_v51, 0 }
   0x5   :  { %v375_v11 = vld [vmem:[%s496_s0 + $0x4] ss:$8 sps:$4 sm:$0xff]   ;;  %v378_v12 = vld [vmem:[%s496_s0 + $0x14] ss:$8 sps:$4 sm:$0xff]   ;;  %v373_v18 = vld [vmem:[%s496_s0] ss:$8 sps:$4 sm:$0xff]  }
   0x6   :  { %v369_v14 = vld [vmem:[%s495_s1 + $0x70] sm:$0xff]   ;;  %198 = vmatprep.mubr.bf16.mxu0 %v375_v11  ;;  %206 = vmatprep.mubr.bf16.mxu1 %v378_v12  ;;  %v371_v16 = vld [vmem:[%s495_s1 + $0x78] sm:$0xff]  }
   0x7   :  { %316 = vmatpush3.bf16.msra.mxu0 %v360_v3  ;;  %350 = vmatpush3.bf16.msra.mxu1 %v360_v3  ;;  %v370_v15 = vld [vmem:[%s495_s1 + $0x30] sm:$0xff]   ;;  %v372_v17 = vld [vmem:[%s495_s1 + $0x38] sm:$0xff]  }
   0x8   :  { %317 = vmatprep.subr.bf16.mxu0 %v361_v4  ;;  %343 = vmatprep.subr.bf16.mxu1 %v361_v4  ;;  %v376_v19 = vld [vmem:[%s496_s0 + $0x10] ss:$8 sps:$4 sm:$0xff]  }
   0xb   :  { %318 = vmatpush3.bf16.msra.mxu0 %v362_v5  ;;  %351 = vmatpush3.bf16.msra.mxu1 %v362_v5 }
   0xc   :  { %319 = vmatprep.subr.bf16.mxu0 %v363_v6  ;;  %344 = vmatprep.subr.bf16.mxu1 %v363_v6 }
   0xf   :  { %320 = vmatpush3.bf16.msra.mxu0 %v364_v7  ;;  %352 = vmatpush3.bf16.msra.mxu1 %v364_v7 }
  0x10   :  { %321 = vmatprep.subr.bf16.mxu0 %v365_v8  ;;  %345 = vmatprep.subr.bf16.mxu1 %v365_v8 }
  0x13   :  { %322 = vmatpush3.bf16.msra.mxu0 %v366_v9  ;;  %353 = vmatpush3.bf16.msra.mxu1 %v366_v9 }
  0x14   :  { %323 = vmatprep.subr.bf16.mxu0 %v367_v10  ;;  %346 = vmatprep.subr.bf16.mxu1 %v367_v10 }
  0x17   :  { %324 = vmatpush3.bf16.msra.mxu0 %v368_v13  ;;  %354 = vmatpush3.bf16.msra.mxu1 %v368_v13 }
  0x18   :  { %325 = vmatprep.subr.bf16.mxu0 %v369_v14  ;;  %347 = vmatprep.subr.bf16.mxu1 %v369_v14 }
  0x1b   :  { %326 = vmatpush3.bf16.msra.mxu0 %v370_v15  ;;  %355 = vmatpush3.bf16.msra.mxu1 %v370_v15 }
  0x1c   :  { %327 = vmatprep.subr.bf16.mxu0 %v371_v16  ;;  %348 = vmatprep.subr.bf16.mxu1 %v371_v16 }
  0x1f   :  { %328 = vmatpush3.bf16.msra.mxu0 %v372_v17  ;;  %356 = vmatpush3.bf16.msra.mxu1 %v372_v17 }
  0x22   :  { %199 = vmatmul.mubr.bf16.vlgmr.msra.gmra.mrb[0].mxu0 %v373_v18  ;;  %207 = vmatmul.mubr.bf16.vlgmr.msra.gmra.mrb[0].mxu1 %v376_v19 }
  0xf5   :  { %v329_v20 = vpop.f32.mrb[0].mxu0  ;;  %v335_v21 = vpop.f32.mrb[0].mxu1 }
  0xf6   :  { %v330_v22 = vpop.f32.mrb[1].mxu0  ;;  %v336_v23 = vpop.f32.mrb[1].mxu1 }
  0xf7   :  { %v331_v24 = vadd.f32 %v330_v22, %v329_v20  ;;  %v337_v25 = vadd.f32 %v336_v23, %v335_v21  ;;  %v332_v26 = vpop.f32.mrb[2].mxu0  ;;  %v338_v27 = vpop.f32.mrb[2].mxu1 }
  0xf8   :  { %v333_v28 = vpop.f32.mrb[3].mxu0  ;;  %v339_v29 = vpop.f32.mrb[3].mxu1 }
  0xf9   :  { %v309_v30 = vpack.c.bf16 %v331_v24, %v331_v24  ;;  %v311_v31 = vpack.c.bf16 %v337_v25, %v337_v25  ;;  %v334_v32 = vadd.f32 %v333_v28, %v332_v26  ;;  %v340_v33 = vadd.f32 %v339_v29, %v338_v27 }
  0xfa   :  { %v243_v34 = vsel %vm236_vm0, %v337_v25, 0.0  ;;  %v237_v35 = vsel %vm236_vm0, %v331_v24, 0.0  ;;  %v249_v41 = vmul.f32 %v331_v24, %v331_v24  ;;  %v251_v45 = vmul.f32 %v337_v25, %v337_v25 }
  0xfb   :  { %232 = vst.msk [vmem:[%s497_s2] sm:$0xf] %vm231_vm1, %v309_v30  ;;  %234 = vst.msk [vmem:[%s497_s2 + $0x8] sm:$0xf] %vm231_vm1, %v311_v31  ;;  %v310_v36 = vpack.c.bf16 %v334_v32, %v334_v32  ;;  %v312_v37 = vpack.c.bf16 %v340_v33, %v340_v33  ;;  %244 = vadd.xlane.f32.xlu1 %v243_v34  ;;  %238 = vadd.xlane.f32.xlu0 %v237_v35  ;;  %v246_v38 = vsel %vm236_vm0, %v340_v33, 0.0 }
  0xfc   :  { %v240_v39 = vsel %vm236_vm0, %v334_v32, 0.0  ;;  %v250_v40 = vmul.f32 %v334_v32, %v334_v32  ;;  %v253_v43 = vsel %vm236_vm0, %v249_v41, 0.0  ;;  %v252_v44 = vmul.f32 %v340_v33, %v340_v33 }
  0xfd   :  { %233 = vst.msk [vmem:[%s497_s2 + $0x4] sm:$0xf] %vm231_vm1, %v310_v36  ;;  %235 = vst.msk [vmem:[%s497_s2 + $0xc] sm:$0xf] %vm231_vm1, %v312_v37  ;;  %v259_v47 = vsel %vm236_vm0, %v251_v45, 0.0 }
  0xfe   :  { %v256_v42 = vsel %vm236_vm0, %v250_v40, 0.0  ;;  %v262_v46 = vsel %vm236_vm0, %v252_v44, 0.0 }
  0xff   :  { %247 = vadd.xlane.f32.xlu1 %v246_v38  ;;  %241 = vadd.xlane.f32.xlu0 %v240_v39 }
 0x103   :  { %257 = vadd.xlane.f32.xlu1 %v256_v42  ;;  %254 = vadd.xlane.f32.xlu0 %v253_v43 }
 0x107   :  { %263 = vadd.xlane.f32.xlu1 %v262_v46  ;;  %260 = vadd.xlane.f32.xlu0 %v259_v47 }
 0x188   :  { %v245_v49 = vpop.xlane.xlu1 %244  ;;  %v239_v50 = vpop.xlane.xlu0 %238 }
 0x18c   :  { %v248_v52 = vpop.xlane.xlu1 %247  ;;  %v242_v53 = vpop.xlane.xlu0 %241 }
 0x190   :  { %v258_v54 = vpop.xlane.xlu1 %257  ;;  %v255_v55 = vpop.xlane.xlu0 %254 }
 0x191   :  { %v269_v56 = vsel %vm267_vm2, %v242_v53, %v258_v54  ;;  %v268_v57 = vsel %vm267_vm2, %v239_v50, %v255_v55 }
 0x192   :  { %274 = vst.msk [vmem:[%s498_s3 + $0x8] sm:$0xff] %vm272_vm3, %v269_v56  ;;  %273 = vst.msk [vmem:[%s498_s3] sm:$0xff] %vm272_vm3, %v268_v57 }
 0x194   :  { %v264_v58 = vpop.xlane.xlu1 %263  ;;  %v261_v59 = vpop.xlane.xlu0 %260 }
 0x195   :  { %v271_v60 = vsel %vm267_vm2, %v248_v52, %v264_v58  ;;  %v270_v61 = vsel %vm267_vm2, %v245_v49, %v261_v59 }
 0x196   :  { %276 = vst.msk [vmem:[%s498_s3 + $0x18] sm:$0xff] %vm272_vm3, %v271_v60  ;;  %275 = vst.msk [vmem:[%s498_s3 + $0x10] sm:$0xff] %vm272_vm3, %v270_v61 }

// kernel: bg_encoder_forward.13
= control target key start
LH: loop header
LB: loop body
LE: loop exit
PB: predicated region body
PF: predicated region fallthrough
CT: control target
= control target key end

     0   :  { %v127_v0 = vmov 0   ;;  %vm98_vm0 = vcmask 257024   ;;  %s190_s1 = inlined_call_operand.vmem [shape: f32[32,1], index: 1, kind: input, shape index: {}]   ;;  %s191_s2 = inlined_call_operand.vmem [shape: f32[32,1], index: 2, kind: input, shape index: {}]   ;;  %s192_s0 = inlined_call_operand.vmem [shape: bf16[32,32], index: 0, kind: input, shape index: {}]   ;;  %s193_s3 = inlined_call_operand.vmem [shape: bf16[32,32], index: 3, kind: output, shape index: {}]  }
   0x1   :  { %126 = vset.pattern.permute.xlu1 %v127_v0  ;;  %125 = vset.pattern.permute.xlu0 %v127_v0  ;;  %v24_v1 = vld [vmem:[%s190_s1 + $0x10] sm:$0xff]  ;;  %v22_v2 = vld [vmem:[%s190_s1] sm:$0xff]  ;;  %v25_v3 = vld [vmem:[%s190_s1 + $0x18] sm:$0xff] }
   0x2   :  { %38 = vperm.xlu1 %126, %v24_v1   ;;  %28 = vperm.xlu0 %125, %v22_v2   ;;  %v23_v4 = vld [vmem:[%s190_s1 + $0x8] sm:$0xff]  ;;  %v50_v6 = vld [vmem:[%s191_s2] sm:$0xff]  ;;  %v53_v7 = vld [vmem:[%s191_s2 + $0x18] sm:$0xff] }
   0x3   :  { %v51_v5 = vld [vmem:[%s191_s2 + $0x8] sm:$0xff]  ;;  %v52_v8 = vld [vmem:[%s191_s2 + $0x10] sm:$0xff]  ;;  %v116_v11 = vld [vmem:[%s192_s0] sm:$0xff]  }
   0x4   :  { %v117_v12 = vunpack.c.l.bf16 %v116_v11  ;;  %v118_v13 = vunpack.c.h.bf16 %v116_v11  ;;  %v123_v14 = vld [vmem:[%s192_s0 + $0x8] sm:$0xff]  }
   0x5   :  { %v121_v17 = vunpack.c.l.bf16 %v123_v14  ;;  %v122_v19 = vunpack.c.h.bf16 %v123_v14 }
   0x6   :  { %43 = vperm.xlu1 %126, %v25_v3   ;;  %33 = vperm.xlu0 %125, %v23_v4  }
   0xa   :  { %61 = vperm.xlu1 %126, %v51_v5   ;;  %56 = vperm.xlu0 %125, %v50_v6  }
   0xe   :  { %71 = vperm.xlu1 %126, %v53_v7   ;;  %66 = vperm.xlu0 %125, %v52_v8  }
  0x81   :  { %v39_v9 = vpop.permute.xlu1 %38  ;;  %v29_v10 = vpop.permute.xlu0 %28 }
  0x82   :  { %v46_v18 = vmul.f32 %v117_v12, %v29_v10  ;;  %v48_v25 = vmul.f32 %v121_v17, %v39_v9 }
  0x85   :  { %v44_v15 = vpop.permute.xlu1 %43  ;;  %v34_v16 = vpop.permute.xlu0 %33 }
  0x86   :  { %v47_v20 = vmul.f32 %v118_v13, %v34_v16  ;;  %v49_v26 = vmul.f32 %v122_v19, %v44_v15 }
  0x89   :  { %v62_v21 = vpop.permute.xlu1 %61  ;;  %v57_v22 = vpop.permute.xlu0 %56 }
  0x8a   :  { %v75_v23 = vadd.f32 %v62_v21, %v47_v20  ;;  %v74_v24 = vadd.f32 %v57_v22, %v46_v18 }
  0x8c   :  { %v79_v27 = vmax.f32 %v75_v23, 0.0  ;;  %v78_v28 = vmax.f32 %v74_v24, 0.0 }
  0x8d   :  { %v72_v29 = vpop.permute.xlu1 %71  ;;  %v67_v30 = vpop.permute.xlu0 %66 }
  0x8e   :  { %v112_v31 = vpack.c.bf16 %v79_v27, %v79_v27  ;;  %v111_v32 = vpack.c.bf16 %v78_v28, %v78_v28  ;;  %v77_v33 = vadd.f32 %v72_v29, %v49_v26  ;;  %v76_v34 = vadd.f32 %v67_v30, %v48_v25 }
  0x90   :  { %100 = vst.msk [vmem:[%s193_s3 + $0x4] sm:$0xf] %vm98_vm0, %v112_v31  ;;  %99 = vst.msk [vmem:[%s193_s3] sm:$0xf] %vm98_vm0, %v111_v32  ;;  %v81_v35 = vmax.f32 %v77_v33, 0.0  ;;  %v80_v36 = vmax.f32 %v76_v34, 0.0 }
  0x92   :  { %v114_v37 = vpack.c.bf16 %v81_v35, %v81_v35  ;;  %v113_v38 = vpack.c.bf16 %v80_v36, %v80_v36 }
  0x94   :  { %102 = vst.msk [vmem:[%s193_s3 + $0xc] sm:$0xf] %vm98_vm0, %v114_v37  ;;  %101 = vst.msk [vmem:[%s193_s3 + $0x8] sm:$0xf] %vm98_vm0, %v113_v38 }

// kernel: bg_encoder_forward.15
= control target key start
LH: loop header
LB: loop body
LE: loop exit
PB: predicated region body
PF: predicated region fallthrough
CT: control target
= control target key end

     0   :  { %v233_v0 = vmov 0   ;;  %vm182_vm0 = vcmask 60416   ;;  %s346_s1 = inlined_call_operand.vmem [shape: f32[64,1], index: 1, kind: input, shape index: {}]   ;;  %s347_s2 = inlined_call_operand.vmem [shape: f32[64,1], index: 2, kind: input, shape index: {}]   ;;  %s348_s0 = inlined_call_operand.vmem [shape: bf16[64,8], index: 0, kind: input, shape index: {}]   ;;  %s349_s3 = inlined_call_operand.vmem [shape: bf16[64,8], index: 3, kind: output, shape index: {}]  }
   0x1   :  { %232 = vset.pattern.permute.xlu1 %v233_v0  ;;  %231 = vset.pattern.permute.xlu0 %v233_v0  ;;  %v32_v1 = vld [vmem:[%s346_s1 + $0x10] sm:$0xff]  ;;  %v30_v2 = vld [vmem:[%s346_s1] sm:$0xff]  ;;  %v33_v3 = vld [vmem:[%s346_s1 + $0x18] sm:$0xff] }
   0x2   :  { %50 = vperm.xlu1 %232, %v32_v1   ;;  %40 = vperm.xlu0 %231, %v30_v2   ;;  %v31_v4 = vld [vmem:[%s346_s1 + $0x8] sm:$0xff]  ;;  %v34_v6 = vld [vmem:[%s346_s1 + $0x20] sm:$0xff]  ;;  %v37_v7 = vld [vmem:[%s346_s1 + $0x38] sm:$0xff] }
   0x3   :  { %v35_v5 = vld [vmem:[%s346_s1 + $0x28] sm:$0xff]  ;;  %v36_v8 = vld [vmem:[%s346_s1 + $0x30] sm:$0xff]  ;;  %v86_v10 = vld [vmem:[%s347_s2] sm:$0xff] }
   0x4   :  { %v87_v9 = vld [vmem:[%s347_s2 + $0x8] sm:$0xff]  ;;  %v89_v11 = vld [vmem:[%s347_s2 + $0x18] sm:$0xff]  ;;  %v88_v12 = vld [vmem:[%s347_s2 + $0x10] sm:$0xff] }
   0x5   :  { %v91_v13 = vld [vmem:[%s347_s2 + $0x28] sm:$0xff]  ;;  %v90_v14 = vld [vmem:[%s347_s2 + $0x20] sm:$0xff]  ;;  %v93_v15 = vld [vmem:[%s347_s2 + $0x38] sm:$0xff] }
   0x6   :  { %55 = vperm.xlu1 %232, %v33_v3   ;;  %45 = vperm.xlu0 %231, %v31_v4   ;;  %v92_v16 = vld [vmem:[%s347_s2 + $0x30] sm:$0xff]  ;;  %v212_v21 = vld [vmem:[%s348_s0] sm:$0xff]   ;;  %v227_v26 = vld [vmem:[%s348_s0 + $0x8] sm:$0xff]  }
   0x7   :  { %v213_v24 = vunpack.c.l.bf16 %v212_v21  ;;  %v214_v25 = vunpack.c.h.bf16 %v212_v21  ;;  %v217_v29 = vunpack.c.l.bf16 %v227_v26  ;;  %v218_v31 = vunpack.c.h.bf16 %v227_v26  ;;  %v228_v33 = vld [vmem:[%s348_s0 + $0x10] sm:$0xff]   ;;  %v229_v42 = vld [vmem:[%s348_s0 + $0x18] sm:$0xff]  }
   0x8   :  { %v222_v38 = vunpack.c.h.bf16 %v228_v33  ;;  %v221_v39 = vunpack.c.l.bf16 %v228_v33  ;;  %v226_v51 = vunpack.c.h.bf16 %v229_v42  ;;  %v225_v52 = vunpack.c.l.bf16 %v229_v42 }
   0xa   :  { %65 = vperm.xlu1 %232, %v35_v5   ;;  %60 = vperm.xlu0 %231, %v34_v6  }
   0xe   :  { %75 = vperm.xlu1 %232, %v37_v7   ;;  %70 = vperm.xlu0 %231, %v36_v8  }
  0x12   :  { %101 = vperm.xlu1 %232, %v87_v9   ;;  %96 = vperm.xlu0 %231, %v86_v10  }
  0x16   :  { %111 = vperm.xlu1 %232, %v89_v11   ;;  %106 = vperm.xlu0 %231, %v88_v12  }
  0x1a   :  { %121 = vperm.xlu1 %232, %v91_v13   ;;  %116 = vperm.xlu0 %231, %v90_v14  }
  0x1e   :  { %131 = vperm.xlu1 %232, %v93_v15   ;;  %126 = vperm.xlu0 %231, %v92_v16  }
  0x81   :  { %v51_v17 = vpop.permute.xlu1 %50  ;;  %v41_v18 = vpop.permute.xlu0 %40 }
  0x82   :  { %v78_v30 = vmul.f32 %v213_v24, %v41_v18  ;;  %v80_v40 = vmul.f32 %v217_v29, %v51_v17 }
  0x85   :  { %v56_v19 = vpop.permute.xlu1 %55  ;;  %v46_v20 = vpop.permute.xlu0 %45 }
  0x86   :  { %v79_v32 = vmul.f32 %v214_v25, %v46_v20  ;;  %v81_v41 = vmul.f32 %v218_v31, %v56_v19 }
  0x89   :  { %v66_v22 = vpop.permute.xlu1 %65  ;;  %v61_v23 = vpop.permute.xlu0 %60 }
  0x8a   :  { %v83_v53 = vmul.f32 %v222_v38, %v66_v22  ;;  %v82_v54 = vmul.f32 %v221_v39, %v61_v23 }
  0x8d   :  { %v76_v27 = vpop.permute.xlu1 %75  ;;  %v71_v28 = vpop.permute.xlu0 %70 }
  0x8e   :  { %v85_v63 = vmul.f32 %v226_v51, %v76_v27  ;;  %v84_v0 = vmul.f32 %v225_v52, %v71_v28 }
  0x91   :  { %v102_v34 = vpop.permute.xlu1 %101  ;;  %v97_v35 = vpop.permute.xlu0 %96 }
  0x92   :  { %v135_v36 = vadd.f32 %v102_v34, %v79_v32  ;;  %v134_v37 = vadd.f32 %v97_v35, %v78_v30 }
  0x94   :  { %v143_v43 = vmax.f32 %v135_v36, 0.0  ;;  %v142_v44 = vmax.f32 %v134_v37, 0.0 }
  0x95   :  { %v112_v45 = vpop.permute.xlu1 %111  ;;  %v107_v46 = vpop.permute.xlu0 %106 }
  0x96   :  { %v204_v47 = vpack.c.bf16 %v143_v43, %v143_v43  ;;  %v203_v48 = vpack.c.bf16 %v142_v44, %v142_v44  ;;  %v137_v49 = vadd.f32 %v112_v45, %v81_v41  ;;  %v136_v50 = vadd.f32 %v107_v46, %v80_v40 }
  0x98   :  { %184 = vst.msk [vmem:[%s349_s3 + $0x4] sm:$0xf] %vm182_vm0, %v204_v47  ;;  %183 = vst.msk [vmem:[%s349_s3] sm:$0xf] %vm182_vm0, %v203_v48  ;;  %v145_v55 = vmax.f32 %v137_v49, 0.0  ;;  %v144_v56 = vmax.f32 %v136_v50, 0.0 }
  0x99   :  { %v122_v57 = vpop.permute.xlu1 %121  ;;  %v117_v58 = vpop.permute.xlu0 %116 }
  0x9a   :  { %v206_v59 = vpack.c.bf16 %v145_v55, %v145_v55  ;;  %v205_v60 = vpack.c.bf16 %v144_v56, %v144_v56  ;;  %v139_v61 = vadd.f32 %v122_v57, %v83_v53  ;;  %v138_v62 = vadd.f32 %v117_v58, %v82_v54 }
  0x9c   :  { %186 = vst.msk [vmem:[%s349_s3 + $0xc] sm:$0xf] %vm182_vm0, %v206_v59  ;;  %185 = vst.msk [vmem:[%s349_s3 + $0x8] sm:$0xf] %vm182_vm0, %v205_v60  ;;  %v147_v1 = vmax.f32 %v139_v61, 0.0  ;;  %v146_v2 = vmax.f32 %v138_v62, 0.0 }
  0x9d   :  { %v132_v3 = vpop.permute.xlu1 %131  ;;  %v127_v4 = vpop.permute.xlu0 %126 }
  0x9e   :  { %v208_v5 = vpack.c.bf16 %v147_v1, %v147_v1  ;;  %v207_v6 = vpack.c.bf16 %v146_v2, %v146_v2  ;;  %v141_v7 = vadd.f32 %v132_v3, %v85_v63  ;;  %v140_v8 = vadd.f32 %v127_v4, %v84_v0 }
  0xa0   :  { %188 = vst.msk [vmem:[%s349_s3 + $0x14] sm:$0xf] %vm182_vm0, %v208_v5  ;;  %187 = vst.msk [vmem:[%s349_s3 + $0x10] sm:$0xf] %vm182_vm0, %v207_v6  ;;  %v149_v9 = vmax.f32 %v141_v7, 0.0  ;;  %v148_v10 = vmax.f32 %v140_v8, 0.0 }
  0xa2   :  { %v210_v11 = vpack.c.bf16 %v149_v9, %v149_v9  ;;  %v209_v12 = vpack.c.bf16 %v148_v10, %v148_v10 }
  0xa4   :  { %190 = vst.msk [vmem:[%s349_s3 + $0x1c] sm:$0xf] %vm182_vm0, %v210_v11  ;;  %189 = vst.msk [vmem:[%s349_s3 + $0x18] sm:$0xf] %vm182_vm0, %v209_v12 }

// kernel: bg_encoder_forward.14
= control target key start
LH: loop header
LB: loop body
LE: loop exit
PB: predicated region body
PF: predicated region fallthrough
CT: control target
= control target key end

     0   :  { %vm537_vm0 = vcmask 64512   ;;  %vm528_vm1 = vcmask 60416   ;;  %vm605_vm3 = vcmask 15360   ;;  %s1074_s1 = inlined_call_operand.vmem [shape: bf16[512,8], index: 1, kind: input, shape index: {}]   ;;  %s1075_s0 = inlined_call_operand.vmem [shape: bf16[64,512], index: 0, kind: input, shape index: {}]   ;;  %s1076_s2 = inlined_call_operand.vmem [shape: bf16[64,8], index: 2, kind: output, shape index: {0}]   ;;  %s1077_s3 = inlined_call_operand.vmem [shape: f32[1,64,2], index: 3, kind: output, shape index: {1}]  }
   0x1   :  { %v766_v0 = vld [vmem:[%s1074_s1 + $0x40] sm:$0xff]   ;;  %v770_v4 = vld [vmem:[%s1074_s1 + $0x48] sm:$0xff]   ;;  %v774_v8 = vld [vmem:[%s1074_s1 + $0x50] sm:$0xff]  }
   0x2   :  { %v767_v1 = vld [vmem:[%s1074_s1 + $0xc0] sm:$0xff]   ;;  %686 = vmatprep.subr.bf16.mxu0 %v766_v0  ;;  %v771_v5 = vld [vmem:[%s1074_s1 + $0xc8] sm:$0xff]   ;;  %v775_v9 = vld [vmem:[%s1074_s1 + $0xd0] sm:$0xff]  }
   0x3   :  { %v768_v2 = vld [vmem:[%s1074_s1] sm:$0xff]   ;;  %726 = vmatprep.subr.bf16.mxu1 %v767_v1  ;;  %v772_v6 = vld [vmem:[%s1074_s1 + $0x8] sm:$0xff]   ;;  %v776_v10 = vld [vmem:[%s1074_s1 + $0x10] sm:$0xff]  }
   0x4   :  { %v769_v3 = vld [vmem:[%s1074_s1 + $0x80] sm:$0xff]   ;;  %687 = vmatpush3.bf16.msra.mxu0 %v768_v2  ;;  %v773_v7 = vld [vmem:[%s1074_s1 + $0x88] sm:$0xff]   ;;  %v777_v11 = vld [vmem:[%s1074_s1 + $0x90] sm:$0xff]  }
   0x5   :  { %727 = vmatpush3.bf16.msra.mxu1 %v769_v3  ;;  %688 = vmatprep.subr.bf16.mxu0 %v770_v4  ;;  %v778_v12 = vld [vmem:[%s1074_s1 + $0x58] sm:$0xff]   ;;  %v782_v16 = vld [vmem:[%s1074_s1 + $0x60] sm:$0xff]   ;;  %v786_v20 = vld [vmem:[%s1074_s1 + $0x68] sm:$0xff]  }
   0x6   :  { %728 = vmatprep.subr.bf16.mxu1 %v771_v5  ;;  %v779_v13 = vld [vmem:[%s1074_s1 + $0xd8] sm:$0xff]   ;;  %v783_v17 = vld [vmem:[%s1074_s1 + $0xe0] sm:$0xff]   ;;  %v787_v21 = vld [vmem:[%s1074_s1 + $0xe8] sm:$0xff]  }
   0x7   :  { %v780_v14 = vld [vmem:[%s1074_s1 + $0x18] sm:$0xff]   ;;  %v784_v18 = vld [vmem:[%s1074_s1 + $0x20] sm:$0xff]   ;;  %v788_v22 = vld [vmem:[%s1074_s1 + $0x28] sm:$0xff]  }
   0x8   :  { %689 = vmatpush3.bf16.msra.mxu0 %v772_v6  ;;  %v781_v15 = vld [vmem:[%s1074_s1 + $0x98] sm:$0xff]   ;;  %v785_v19 = vld [vmem:[%s1074_s1 + $0xa0] sm:$0xff]   ;;  %v789_v23 = vld [vmem:[%s1074_s1 + $0xa8] sm:$0xff]  }
   0x9   :  { %729 = vmatpush3.bf16.msra.mxu1 %v773_v7  ;;  %690 = vmatprep.subr.bf16.mxu0 %v774_v8  ;;  %v790_v24 = vld [vmem:[%s1074_s1 + $0x70] sm:$0xff]   ;;  %v794_v28 = vld [vmem:[%s1074_s1 + $0x78] sm:$0xff]  }
   0xa   :  { %730 = vmatprep.subr.bf16.mxu1 %v775_v9  ;;  %v791_v25 = vld [vmem:[%s1074_s1 + $0xf0] sm:$0xff]   ;;  %v795_v29 = vld [vmem:[%s1074_s1 + $0xf8] sm:$0xff]  }
   0xb   :  { %v792_v26 = vld [vmem:[%s1074_s1 + $0x30] sm:$0xff]   ;;  %v796_v30 = vld [vmem:[%s1074_s1 + $0x38] sm:$0xff]  }
   0xc   :  { %691 = vmatpush3.bf16.msra.mxu0 %v776_v10  ;;  %v793_v27 = vld [vmem:[%s1074_s1 + $0xb0] sm:$0xff]   ;;  %v797_v31 = vld [vmem:[%s1074_s1 + $0xb8] sm:$0xff]  }
   0xd   :  { %731 = vmatpush3.bf16.msra.mxu1 %v777_v11  ;;  %692 = vmatprep.subr.bf16.mxu0 %v778_v12  ;;  %v798_v32 = vld [vmem:[%s1075_s0] ss:$16 sps:$4 sm:$0xff]   ;;  %v800_v33 = vld [vmem:[%s1075_s0 + $0x4] ss:$16 sps:$4 sm:$0xff]   ;;  %v801_v34 = vld [vmem:[%s1075_s0 + $0x8] ss:$16 sps:$4 sm:$0xff]  }
   0xe   :  { %732 = vmatprep.subr.bf16.mxu1 %v779_v13  ;;  %v803_v35 = vld [vmem:[%s1075_s0 + $0xc] ss:$16 sps:$4 sm:$0xff]   ;;  %398 = vmatprep.mubr.bf16.mxu0 %v800_v33  ;;  %v804_v36 = vld [vmem:[%s1075_s0 + $0x24] ss:$16 sps:$4 sm:$0xff]   ;;  %v808_v38 = vld [vmem:[%s1075_s0 + $0x20] ss:$16 sps:$4 sm:$0xff]  }
   0xf   :  { %463 = vmatprep.mubr.bf16.mxu1 %v803_v35  ;;  %v806_v37 = vld [vmem:[%s1075_s0 + $0x2c] ss:$16 sps:$4 sm:$0xff]   ;;  %v809_v39 = vld [vmem:[%s1075_s0 + $0x28] ss:$16 sps:$4 sm:$0xff]   ;;  %v810_v40 = vld [vmem:[%s1075_s0 + $0x44] ss:$16 sps:$4 sm:$0xff]  }
  0x10   :  { %693 = vmatpush3.bf16.msra.mxu0 %v780_v14  ;;  %v812_v41 = vld [vmem:[%s1075_s0 + $0x4c] ss:$16 sps:$4 sm:$0xff]   ;;  %v814_v42 = vld [vmem:[%s1075_s0 + $0x40] ss:$16 sps:$4 sm:$0xff]   ;;  %v815_v43 = vld [vmem:[%s1075_s0 + $0x48] ss:$16 sps:$4 sm:$0xff]  }
  0x11   :  { %733 = vmatpush3.bf16.msra.mxu1 %v781_v15  ;;  %694 = vmatprep.subr.bf16.mxu0 %v782_v16  ;;  %v816_v44 = vld [vmem:[%s1075_s0 + $0x64] ss:$16 sps:$4 sm:$0xff]   ;;  %v818_v45 = vld [vmem:[%s1075_s0 + $0x6c] ss:$16 sps:$4 sm:$0xff]   ;;  %v820_v46 = vld [vmem:[%s1075_s0 + $0x60] ss:$16 sps:$4 sm:$0xff]  }
  0x12   :  { %734 = vmatprep.subr.bf16.mxu1 %v783_v17  ;;  %v821_v47 = vld [vmem:[%s1075_s0 + $0x68] ss:$16 sps:$4 sm:$0xff]  }
  0x14   :  { %695 = vmatpush3.bf16.msra.mxu0 %v784_v18 }
  0x15   :  { %735 = vmatpush3.bf16.msra.mxu1 %v785_v19  ;;  %696 = vmatprep.subr.bf16.mxu0 %v786_v20 }
  0x16   :  { %736 = vmatprep.subr.bf16.mxu1 %v787_v21 }
  0x18   :  { %697 = vmatpush3.bf16.msra.mxu0 %v788_v22 }
  0x19   :  { %737 = vmatpush3.bf16.msra.mxu1 %v789_v23  ;;  %698 = vmatprep.subr.bf16.mxu0 %v790_v24 }
  0x1a   :  { %738 = vmatprep.subr.bf16.mxu1 %v791_v25 }
  0x1c   :  { %699 = vmatpush3.bf16.msra.mxu0 %v792_v26 }
  0x1d   :  { %739 = vmatpush3.bf16.msra.mxu1 %v793_v27  ;;  %700 = vmatprep.subr.bf16.mxu0 %v794_v28 }
  0x1e   :  { %740 = vmatprep.subr.bf16.mxu1 %v795_v29 }
  0x20   :  { %701 = vmatpush3.bf16.msra.mxu0 %v796_v30 }
  0x21   :  { %741 = vmatpush3.bf16.msra.mxu1 %v797_v31 }
  0x23   :  { %399 = vmatmul.mubr.bf16.vlgmr.msra.gmra.mrb[0].mxu0 %v798_v32 }
  0x24   :  { %464 = vmatmul.mubr.bf16.vlgmr.msra.gmra.mrb[0].mxu1 %v801_v34  ;;  %406 = vmatprep.mubr.bf16.mxu0 %v804_v36 }
  0x25   :  { %471 = vmatprep.mubr.bf16.mxu1 %v806_v37 }
  0x2b   :  { %407 = vmatmul.mubr.bf16.gmra.mrb[4].mxu0 %v808_v38 }
  0x2c   :  { %472 = vmatmul.mubr.bf16.gmra.mrb[4].mxu1 %v809_v39  ;;  %414 = vmatprep.mubr.bf16.mxu0 %v810_v40 }
  0x2d   :  { %479 = vmatprep.mubr.bf16.mxu1 %v812_v41 }
  0x33   :  { %415 = vmatmul.mubr.bf16.gmra.mrb[8].mxu0 %v814_v42 }
  0x34   :  { %480 = vmatmul.mubr.bf16.gmra.mrb[8].mxu1 %v815_v43  ;;  %422 = vmatprep.mubr.bf16.mxu0 %v816_v44 }
  0x35   :  { %487 = vmatprep.mubr.bf16.mxu1 %v818_v45 }
  0x3b   :  { %423 = vmatmul.mubr.bf16.gmra.mrb[12].mxu0 %v820_v46 }
  0x3c   :  { %488 = vmatmul.mubr.bf16.gmra.mrb[12].mxu1 %v821_v47 }
  0xf6   :  { %v702_v48 = vpop.f32.mrb[0].mxu0 }
  0xf7   :  { %v742_v49 = vpop.f32.mrb[0].mxu1  ;;  %v703_v50 = vpop.f32.mrb[1].mxu0 }
  0xf8   :  { %v704_v51 = vadd.f32 %v703_v50, %v702_v48  ;;  %v743_v52 = vpop.f32.mrb[1].mxu1  ;;  %v705_v53 = vpop.f32.mrb[2].mxu0 }
  0xf9   :  { %v744_v54 = vadd.f32 %v743_v52, %v742_v49  ;;  %v745_v55 = vpop.f32.mrb[2].mxu1  ;;  %v706_v56 = vpop.f32.mrb[3].mxu0 }
  0xfa   :  { %v707_v57 = vadd.f32 %v706_v56, %v705_v53  ;;  %v746_v58 = vpop.f32.mrb[3].mxu1 }
  0xfb   :  { %v466_v59 = vadd.f32 %v744_v54, %v704_v51  ;;  %v747_v60 = vadd.f32 %v746_v58, %v745_v55 }
  0xfd   :  { %v678_v61 = vpack.c.bf16 %v466_v59, %v466_v59  ;;  %v469_v62 = vadd.f32 %v747_v60, %v707_v57  ;;  %v538_v63 = vsel %vm537_vm0, %v466_v59, 0.0  ;;  %v562_v8 = vmul.f32 %v466_v59, %v466_v59 }
  0xfe   :  { %539 = vadd.xlane.f32.xlu0 %v538_v63  ;;  %v708_v0 = vpop.f32.mrb[4].mxu0 }
  0xff   :  { %529 = vst.msk [vmem:[%s1076_s2] sm:$0xf] %vm528_vm1, %v678_v61  ;;  %v679_v1 = vpack.c.bf16 %v469_v62, %v469_v62  ;;  %v748_v2 = vpop.f32.mrb[4].mxu1  ;;  %v709_v3 = vpop.f32.mrb[5].mxu0  ;;  %v563_v4 = vmul.f32 %v469_v62, %v469_v62  ;;  %v541_v13 = vsel %vm537_vm0, %v469_v62, 0.0  ;;  %v570_v18 = vsel %vm537_vm0, %v562_v8, 0.0 }
 0x100   :  { %v710_v5 = vadd.f32 %v709_v3, %v708_v0  ;;  %v749_v6 = vpop.f32.mrb[5].mxu1  ;;  %v711_v7 = vpop.f32.mrb[6].mxu0  ;;  %v594_v8 = vlaneseq }
 0x101   :  { %530 = vst.msk [vmem:[%s1076_s2 + $0x4] sm:$0xf] %vm528_vm1, %v679_v1  ;;  %v750_v9 = vadd.f32 %v749_v6, %v748_v2  ;;  %v751_v10 = vpop.f32.mrb[6].mxu1  ;;  %v712_v11 = vpop.f32.mrb[7].mxu0  ;;  %v573_v12 = vsel %vm537_vm0, %v563_v4, 0.0 }
 0x102   :  { %v713_v14 = vadd.f32 %v712_v11, %v711_v7  ;;  %v752_v15 = vpop.f32.mrb[7].mxu1  ;;  %574 = vadd.xlane.f32.xlu1 %v573_v12  ;;  %542 = vadd.xlane.f32.xlu0 %v541_v13 }
 0x103   :  { %v474_v16 = vadd.f32 %v750_v9, %v710_v5  ;;  %v753_v17 = vadd.f32 %v752_v15, %v751_v10  ;;  %v595_v9 = vand.u32 127, %v594_v8 }
 0x105   :  { %v680_v19 = vpack.c.bf16 %v474_v16, %v474_v16  ;;  %v477_v20 = vadd.f32 %v753_v17, %v713_v14  ;;  %v544_v21 = vsel %vm537_vm0, %v474_v16, 0.0  ;;  %v564_v22 = vmul.f32 %v474_v16, %v474_v16 }
 0x106   :  { %545 = vadd.xlane.f32.xlu1 %v544_v21  ;;  %571 = vadd.xlane.f32.xlu0 %v570_v18  ;;  %v714_v23 = vpop.f32.mrb[8].mxu0  ;;  %vm596_vm2 = vcmp.eq.s32.totalorder %v595_v9, 0 }
 0x107   :  { %531 = vst.msk [vmem:[%s1076_s2 + $0x8] sm:$0xf] %vm528_vm1, %v680_v19  ;;  %v681_v24 = vpack.c.bf16 %v477_v20, %v477_v20  ;;  %v754_v25 = vpop.f32.mrb[8].mxu1  ;;  %v715_v26 = vpop.f32.mrb[9].mxu0  ;;  %v565_v30 = vmul.f32 %v477_v20, %v477_v20  ;;  %v547_v34 = vsel %vm537_vm0, %v477_v20, 0.0  ;;  %v576_v35 = vsel %vm537_vm0, %v564_v22, 0.0 }
 0x108   :  { %v716_v27 = vadd.f32 %v715_v26, %v714_v23  ;;  %v755_v28 = vpop.f32.mrb[9].mxu1  ;;  %v717_v29 = vpop.f32.mrb[10].mxu0 }
 0x109   :  { %532 = vst.msk [vmem:[%s1076_s2 + $0xc] sm:$0xf] %vm528_vm1, %v681_v24  ;;  %v756_v31 = vadd.f32 %v755_v28, %v754_v25  ;;  %v757_v32 = vpop.f32.mrb[10].mxu1  ;;  %v718_v33 = vpop.f32.mrb[11].mxu0  ;;  %v579_v40 = vsel %vm537_vm0, %v565_v30, 0.0 }
 0x10a   :  { %v719_v36 = vadd.f32 %v718_v33, %v717_v29  ;;  %v758_v37 = vpop.f32.mrb[11].mxu1  ;;  %548 = vadd.xlane.f32.xlu1 %v547_v34  ;;  %577 = vadd.xlane.f32.xlu0 %v576_v35 }
 0x10b   :  { %v482_v38 = vadd.f32 %v756_v31, %v716_v27  ;;  %v759_v39 = vadd.f32 %v758_v37, %v757_v32 }
 0x10d   :  { %v682_v41 = vpack.c.bf16 %v482_v38, %v482_v38  ;;  %v485_v42 = vadd.f32 %v759_v39, %v719_v36  ;;  %v550_v43 = vsel %vm537_vm0, %v482_v38, 0.0  ;;  %v566_v44 = vmul.f32 %v482_v38, %v482_v38 }
 0x10e   :  { %580 = vadd.xlane.f32.xlu1 %v579_v40  ;;  %551 = vadd.xlane.f32.xlu0 %v550_v43  ;;  %v720_v45 = vpop.f32.mrb[12].mxu0 }
 0x10f   :  { %533 = vst.msk [vmem:[%s1076_s2 + $0x10] sm:$0xf] %vm528_vm1, %v682_v41  ;;  %v683_v46 = vpack.c.bf16 %v485_v42, %v485_v42  ;;  %v760_v47 = vpop.f32.mrb[12].mxu1  ;;  %v721_v48 = vpop.f32.mrb[13].mxu0  ;;  %v582_v49 = vsel %vm537_vm0, %v566_v44, 0.0  ;;  %v567_v53 = vmul.f32 %v485_v42, %v485_v42  ;;  %v553_v57 = vsel %vm537_vm0, %v485_v42, 0.0 }
 0x110   :  { %v722_v50 = vadd.f32 %v721_v48, %v720_v45  ;;  %v761_v51 = vpop.f32.mrb[13].mxu1  ;;  %v723_v52 = vpop.f32.mrb[14].mxu0 }
 0x111   :  { %534 = vst.msk [vmem:[%s1076_s2 + $0x14] sm:$0xf] %vm528_vm1, %v683_v46  ;;  %v762_v54 = vadd.f32 %v761_v51, %v760_v47  ;;  %v763_v55 = vpop.f32.mrb[14].mxu1  ;;  %v724_v56 = vpop.f32.mrb[15].mxu0  ;;  %v585_v62 = vsel %vm537_vm0, %v567_v53, 0.0 }
 0x112   :  { %v725_v58 = vadd.f32 %v724_v56, %v723_v52  ;;  %v764_v59 = vpop.f32.mrb[15].mxu1  ;;  %554 = vadd.xlane.f32.xlu1 %v553_v57  ;;  %583 = vadd.xlane.f32.xlu0 %v582_v49 }
 0x113   :  { %v490_v60 = vadd.f32 %v762_v54, %v722_v50  ;;  %v765_v61 = vadd.f32 %v764_v59, %v763_v55 }
 0x115   :  { %v684_v63 = vpack.c.bf16 %v490_v60, %v490_v60  ;;  %v493_v0 = vadd.f32 %v765_v61, %v725_v58  ;;  %v556_v1 = vsel %vm537_vm0, %v490_v60, 0.0  ;;  %v568_v2 = vmul.f32 %v490_v60, %v490_v60 }
 0x116   :  { %586 = vadd.xlane.f32.xlu1 %v585_v62  ;;  %557 = vadd.xlane.f32.xlu0 %v556_v1 }
 0x117   :  { %535 = vst.msk [vmem:[%s1076_s2 + $0x18] sm:$0xf] %vm528_vm1, %v684_v63  ;;  %v685_v3 = vpack.c.bf16 %v493_v0, %v493_v0  ;;  %v588_v4 = vsel %vm537_vm0, %v568_v2, 0.0  ;;  %v559_v5 = vsel %vm537_vm0, %v493_v0, 0.0  ;;  %v569_v6 = vmul.f32 %v493_v0, %v493_v0 }
 0x119   :  { %536 = vst.msk [vmem:[%s1076_s2 + $0x1c] sm:$0xf] %vm528_vm1, %v685_v3  ;;  %v591_v7 = vsel %vm537_vm0, %v569_v6, 0.0 }
 0x11a   :  { %560 = vadd.xlane.f32.xlu1 %v559_v5  ;;  %589 = vadd.xlane.f32.xlu0 %v588_v4 }
 0x11e   :  { %592 = vadd.xlane.f32.xlu1 %v591_v7 }
 0x18b   :  { %v540_v10 = vpop.xlane.xlu0 %539 }
 0x18f   :  { %v575_v11 = vpop.xlane.xlu1 %574  ;;  %v543_v12 = vpop.xlane.xlu0 %542 }
 0x190   :  { %v598_v13 = vsel %vm596_vm2, %v543_v12, %v575_v11 }
 0x191   :  { %607 = vst.msk [vmem:[%s1077_s3 + $0x8] sm:$0xff] %vm605_vm3, %v598_v13 }
 0x193   :  { %v546_v14 = vpop.xlane.xlu1 %545  ;;  %v572_v15 = vpop.xlane.xlu0 %571 }
 0x194   :  { %v597_v16 = vsel %vm596_vm2, %v540_v10, %v572_v15 }
 0x195   :  { %606 = vst.msk [vmem:[%s1077_s3] sm:$0xff] %vm605_vm3, %v597_v16 }
 0x197   :  { %v549_v17 = vpop.xlane.xlu1 %548  ;;  %v578_v18 = vpop.xlane.xlu0 %577 }
 0x198   :  { %v599_v19 = vsel %vm596_vm2, %v546_v14, %v578_v18 }
 0x199   :  { %608 = vst.msk [vmem:[%s1077_s3 + $0x10] sm:$0xff] %vm605_vm3, %v599_v19 }
 0x19b   :  { %v581_v20 = vpop.xlane.xlu1 %580  ;;  %v552_v21 = vpop.xlane.xlu0 %551 }
 0x19c   :  { %v600_v22 = vsel %vm596_vm2, %v549_v17, %v581_v20 }
 0x19d   :  { %609 = vst.msk [vmem:[%s1077_s3 + $0x18] sm:$0xff] %vm605_vm3, %v600_v22 }
 0x19f   :  { %v555_v23 = vpop.xlane.xlu1 %554  ;;  %v584_v24 = vpop.xlane.xlu0 %583 }
 0x1a0   :  { %v601_v25 = vsel %vm596_vm2, %v552_v21, %v584_v24 }
 0x1a1   :  { %610 = vst.msk [vmem:[%s1077_s3 + $0x20] sm:$0xff] %vm605_vm3, %v601_v25 }
 0x1a3   :  { %v587_v26 = vpop.xlane.xlu1 %586  ;;  %v558_v27 = vpop.xlane.xlu0 %557 }
 0x1a4   :  { %v602_v28 = vsel %vm596_vm2, %v555_v23, %v587_v26 }
 0x1a5   :  { %611 = vst.msk [vmem:[%s1077_s3 + $0x28] sm:$0xff] %vm605_vm3, %v602_v28 }
 0x1a7   :  { %v561_v29 = vpop.xlane.xlu1 %560  ;;  %v590_v30 = vpop.xlane.xlu0 %589 }
 0x1a8   :  { %v603_v31 = vsel %vm596_vm2, %v558_v27, %v590_v30 }
 0x1a9   :  { %612 = vst.msk [vmem:[%s1077_s3 + $0x30] sm:$0xff] %vm605_vm3, %v603_v31 }
 0x1ab   :  { %v593_v32 = vpop.xlane.xlu1 %592 }
 0x1ac   :  { %v604_v33 = vsel %vm596_vm2, %v561_v29, %v593_v32 }
 0x1ad   :  { %613 = vst.msk [vmem:[%s1077_s3 + $0x38] sm:$0xff] %vm605_vm3, %v604_v33 }

</bundles_post_ra>
